<compile_context>
chip_gen: v7x
topology: tpu7x:2x2x1
jax: 0.10.0
libtpu: 0.0.40
codegen_flags: <defaults>
</compile_context>

<pallas_src>
from functools import partial

import jax
import jax.numpy as jnp
from jax import lax
from jax.experimental import pallas as pl
from jax.experimental.pallas import tpu as pltpu


def _cross_attention_kernel(xq_ref, xkv_ref, wq_ref, wkv_ref, wp_ref, bp_ref, o_ref,
                            *, num_heads, block_b, seq_len, head_dim):
    H, N, D = num_heads, seq_len, head_dim
    C = H * D

    xq = xq_ref[...]      # (rows, C)  bf16
    xkv = xkv_ref[...]    # (rows, C)  bf16

    # Lane-dense full-width projections (softmax scale already folded into W_q):
    # one (rows,C)@(C,C) and one (rows,C)@(C,2C) instead of 3*H tiny D-wide matmuls.
    q_full = jnp.dot(xq, wq_ref[...],
                     preferred_element_type=jnp.float32).astype(jnp.bfloat16)   # (rows, C)
    kv_full = jnp.dot(xkv, wkv_ref[...],
                      preferred_element_type=jnp.float32).astype(jnp.bfloat16)  # (rows, 2C)

    # Attention is block-diagonal over the batch elements packed into this tile;
    # heads are static lane slices of the projected slabs.
    ctx_rows = []
    for b in range(block_b):
        r0 = b * N
        head_outs = []
        for h in range(H):
            c0 = h * D
            qb = q_full[r0:r0 + N, c0:c0 + D]                 # (N, D) bf16
            kb = kv_full[r0:r0 + N, c0:c0 + D]                # (N, D) bf16
            vb = kv_full[r0:r0 + N, C + c0:C + c0 + D]        # (N, D) bf16

            # Contract last dims of qb and kb directly (no explicit transpose).
            s = lax.dot_general(qb, kb, (((1,), (1,)), ((), ())),
                                preferred_element_type=jnp.float32)    # (N, N) f32
            s = s - jnp.max(s, axis=-1, keepdims=True)
            p = jnp.exp(s)
            denom = jnp.sum(p, axis=-1, keepdims=True)
            o_b = jnp.dot(p.astype(jnp.bfloat16), vb,
                          preferred_element_type=jnp.float32)          # (N, D) f32
            # Deferred normalization: scale N*D outputs instead of N*N probabilities.
            o_b = o_b * pl.reciprocal(denom, approx=True)
            head_outs.append(o_b)
        ctx_rows.append(jnp.concatenate(head_outs, axis=-1))           # (N, C) f32
    ctx = ctx_rows[0] if block_b == 1 else jnp.concatenate(ctx_rows, axis=0)

    # Single 64-deep output-projection matmul + bias; register accumulation, one store.
    out = jnp.dot(ctx.astype(jnp.bfloat16), wp_ref[...],
                  preferred_element_type=jnp.float32) + bp_ref[...]
    o_ref[...] = out.astype(o_ref.dtype)


def cross_attention(x_q, x_kv, w_q, w_kv, w_proj, b_proj, *, num_heads, block_b=None):
    """x_q, x_kv: (B, N, C); w_q: (C, C); w_kv: (C, 2C); w_proj: (C, C); b_proj: (C,)."""
    B, N, C = x_q.shape
    assert x_q.shape == x_kv.shape     # same assert as the PyTorch module
    H = num_heads
    assert C % H == 0
    D = C // H
    scale = D ** (-0.5)

    # Pack several batch elements per grid step for better MXU row fill, but never let
    # the grid drop below 2 steps (keeps both v7x TensorCores busy via "parallel").
    if block_b is None:
        cap = max(1, 256 // max(N, 1))          # ~256-row slabs (v6e/v7x MXU height)
        if B >= 2:
            cap = min(cap, B // 2)
        block_b = max(d for d in range(1, B + 1) if B % d == 0 and d <= cap)
    assert B % block_b == 0
    rows = block_b * N

    # Parameter prep (plain XLA, once): fold softmax scale into W_q; cast matmul operands
    # to bf16 (f32 accumulation in-kernel); keep bias in f32.
    wq = (w_q * scale).astype(jnp.bfloat16)     # (C, C)
    wkv = w_kv.astype(jnp.bfloat16)             # (C, 2C)  [W_k | W_v]
    wp = w_proj.astype(jnp.bfloat16)            # (C, C)
    bp = b_proj.reshape(1, C).astype(jnp.float32)

    # Flatten (B, N, C) -> (B*N, C) so the kernel works on dense 2-D row slabs.
    xq2 = x_q.reshape(B * N, C).astype(jnp.bfloat16)
    xkv2 = x_kv.reshape(B * N, C).astype(jnp.bfloat16)

    kernel = partial(_cross_attention_kernel, num_heads=H, block_b=block_b,
                     seq_len=N, head_dim=D)

    out = pl.pallas_call(
        kernel,
        out_shape=jax.ShapeDtypeStruct((B * N, C), x_q.dtype),
        grid=(B // block_b,),
        in_specs=[
            pl.BlockSpec((rows, C), lambda i: (i, 0)),        # x_q rows for this batch tile
            pl.BlockSpec((rows, C), lambda i: (i, 0)),        # x_kv rows
            pl.BlockSpec((C, C), lambda i: (0, 0)),           # W_q (scale folded), bf16
            pl.BlockSpec((C, 2 * C), lambda i: (0, 0)),       # [W_k | W_v], bf16
            pl.BlockSpec((C, C), lambda i: (0, 0)),           # W_proj, bf16
            pl.BlockSpec((1, C), lambda i: (0, 0)),           # b_proj, f32
        ],
        out_specs=pl.BlockSpec((rows, C), lambda i: (i, 0)),
        compiler_params=pltpu.CompilerParams(
            dimension_semantics=("parallel",)),
    )(xq2, xkv2, wq, wkv, wp, bp)

    return out.reshape(B, N, C)


def _reference(x_q, x_kv, w_q, w_kv, w_proj, b_proj, *, num_heads):
    """Pure-JAX f32 replica of the PyTorch forward (eval mode)."""
    B, N, C = x_q.shape
    D = C // num_heads
    scale = D ** (-0.5)
    kv = (x_kv @ w_kv).reshape(B, N, 2, num_heads, D).transpose(2, 0, 3, 1, 4)
    k, v = kv[0], kv[1]                                             # (B, H, N, D)
    q = (x_q @ w_q).reshape(B, N, 1, num_heads, D).transpose(2, 0, 3, 1, 4)[0]
    attn = jnp.einsum('bhnd,bhmd->bhnm', q, k) * scale
    attn = jax.nn.softmax(attn, axis=-1)
    out = jnp.einsum('bhnm,bhmd->bhnd', attn, v)                    # (B, H, N, D)
    out = out.transpose(0, 2, 1, 3).reshape(B, N, C)
    return out @ w_proj + b_proj


if __name__ == "__main__":
    B, N, C, H = 2, 16, 64, 8   # dim=64, num_heads=8 -> head_dim=8

    key = jax.random.PRNGKey(0)
    k1, k2, k3, k4, k5, k6 = jax.random.split(key, 6)

    x_q = jax.random.normal(k1, (B, N, C), dtype=jnp.float32)
    x_kv = jax.random.normal(k2, (B, N, C), dtype=jnp.float32)

    # Deterministic parameter init (stored pre-transposed: (in_features, out_features)).
    w_q = jax.random.normal(k3, (C, C), dtype=jnp.float32) * 0.05
    w_kv = jax.random.normal(k4, (C, 2 * C), dtype=jnp.float32) * 0.05
    w_proj = jax.random.normal(k5, (C, C), dtype=jnp.float32) * 0.05
    b_proj = jax.random.normal(k6, (C,), dtype=jnp.float32) * 0.05

    out = cross_attention(x_q, x_kv, w_q, w_kv, w_proj, b_proj, num_heads=H)
    out = jax.block_until_ready(out)

    ref = _reference(x_q, x_kv, w_q, w_kv, w_proj, b_proj, num_heads=H)
    assert out.shape == (B, N, C)
    # bf16 matmul operands (f32 accumulation) + approx reciprocal -> looser tolerance.
    assert jnp.allclose(out, ref, atol=2e-2, rtol=2e-2), "mismatch vs. pure-JAX reference"

    print("KERNEL_OK")
</pallas_src>

<mosaic_0001>
module attributes {stable_mosaic.version = 11 : i64} {
  func.func @_cross_attention_kernel(%arg0: i32, %arg1: memref<16x64xbf16, #tpu.memory_space<vmem>>, %arg2: memref<16x64xbf16, #tpu.memory_space<vmem>>, %arg3: memref<64x64xbf16, #tpu.memory_space<vmem>>, %arg4: memref<64x128xbf16, #tpu.memory_space<vmem>>, %arg5: memref<64x64xbf16, #tpu.memory_space<vmem>>, %arg6: memref<1x64xf32, #tpu.memory_space<vmem>>, %arg7: memref<16x64xf32, #tpu.memory_space<vmem>>) attributes {dimension_semantics = [#tpu.dimension_semantics<parallel>], iteration_bounds = array<i64: 2>, scalar_prefetch = 0 : i64, scratch_operands = 0 : i64, tpu.core_type = #tpu.core_type<tc>, window_params = [{transform_indices = @transform_0, window_bounds = array<i64: 16, 64>}, {transform_indices = @transform_1, window_bounds = array<i64: 16, 64>}, {pipeline_mode = #tpu.pipeline_mode<synchronous>, transform_indices = @transform_2, window_bounds = array<i64: 64, 64>}, {pipeline_mode = #tpu.pipeline_mode<synchronous>, transform_indices = @transform_3, window_bounds = array<i64: 64, 128>}, {pipeline_mode = #tpu.pipeline_mode<synchronous>, transform_indices = @transform_4, window_bounds = array<i64: 64, 64>}, {pipeline_mode = #tpu.pipeline_mode<synchronous>, transform_indices = @transform_5, window_bounds = array<i64: 1, 64>}, {transform_indices = @transform_6, window_bounds = array<i64: 16, 64>}]} {
    %c0 = arith.constant 0 : index
    %c0_0 = arith.constant 0 : index
    %0 = vector.load %arg1[%c0, %c0_0] : memref<16x64xbf16, #tpu.memory_space<vmem>>, vector<16x64xbf16>
    %c0_1 = arith.constant 0 : index
    %c0_2 = arith.constant 0 : index
    %1 = vector.load %arg2[%c0_1, %c0_2] : memref<16x64xbf16, #tpu.memory_space<vmem>>, vector<16x64xbf16>
    %c0_3 = arith.constant 0 : index
    %c0_4 = arith.constant 0 : index
    %2 = vector.load %arg3[%c0_3, %c0_4] : memref<64x64xbf16, #tpu.memory_space<vmem>>, vector<64x64xbf16>
    %cst = arith.constant dense<0.000000e+00> : vector<16x64xf32>
    %3 = tpu.matmul %0, %2, %cst {dimension_numbers = #tpu.dot_dimension_numbers<[1], [0], [0], [1], [0, 0, 1, 1], [], []>} : vector<16x64xbf16>, vector<64x64xbf16>, vector<16x64xf32> -> vector<16x64xf32>
    %4 = arith.truncf %3 : vector<16x64xf32> to vector<16x64xbf16>
    %c0_5 = arith.constant 0 : index
    %c0_6 = arith.constant 0 : index
    %5 = vector.load %arg4[%c0_5, %c0_6] : memref<64x128xbf16, #tpu.memory_space<vmem>>, vector<64x128xbf16>
    %cst_7 = arith.constant dense<0.000000e+00> : vector<16x128xf32>
    %6 = tpu.matmul %1, %5, %cst_7 {dimension_numbers = #tpu.dot_dimension_numbers<[1], [0], [0], [1], [0, 0, 1, 1], [], []>} : vector<16x64xbf16>, vector<64x128xbf16>, vector<16x128xf32> -> vector<16x128xf32>
    %7 = arith.truncf %6 : vector<16x128xf32> to vector<16x128xbf16>
    %8 = vector.extract_strided_slice %4 {offsets = [0, 0], sizes = [16, 8], strides = [1, 1]} : vector<16x64xbf16> to vector<16x8xbf16>
    %9 = vector.extract_strided_slice %7 {offsets = [0, 0], sizes = [16, 8], strides = [1, 1]} : vector<16x128xbf16> to vector<16x8xbf16>
    %10 = vector.extract_strided_slice %7 {offsets = [0, 64], sizes = [16, 8], strides = [1, 1]} : vector<16x128xbf16> to vector<16x8xbf16>
    %cst_8 = arith.constant dense<0.000000e+00> : vector<16x16xf32>
    %11 = tpu.matmul %8, %9, %cst_8 {dimension_numbers = #tpu.dot_dimension_numbers<[1], [1], [0], [0], [0, 0, 1, 0], [], []>} : vector<16x8xbf16>, vector<16x8xbf16>, vector<16x16xf32> -> vector<16x16xf32>
    %cst_9 = arith.constant dense<0xFF800000> : vector<16xf32>
    %12 = vector.multi_reduction <maximumf>, %11, %cst_9 [1] : vector<16x16xf32> to vector<16xf32>
    %13 = vector.shape_cast %12 : vector<16xf32> to vector<16x1xf32>
    %14 = vector.broadcast %13 : vector<16x1xf32> to vector<16x16xf32>
    %15 = arith.subf %11, %14 : vector<16x16xf32>
    %16 = math.exp %15 : vector<16x16xf32>
    %cst_10 = arith.constant dense<0.000000e+00> : vector<16xf32>
    %17 = vector.multi_reduction <add>, %16, %cst_10 [1] : vector<16x16xf32> to vector<16xf32>
    %18 = vector.shape_cast %17 : vector<16xf32> to vector<16x1xf32>
    %19 = arith.truncf %16 : vector<16x16xf32> to vector<16x16xbf16>
    %cst_11 = arith.constant dense<0.000000e+00> : vector<16x8xf32>
    %20 = tpu.matmul %19, %10, %cst_11 {dimension_numbers = #tpu.dot_dimension_numbers<[1], [0], [0], [1], [0, 0, 1, 1], [], []>} : vector<16x16xbf16>, vector<16x8xbf16>, vector<16x8xf32> -> vector<16x8xf32>
    %21 = tpu.reciprocal %18 {approx = true} : vector<16x1xf32> -> vector<16x1xf32>
    %22 = vector.broadcast %21 : vector<16x1xf32> to vector<16x8xf32>
    %23 = arith.mulf %20, %22 : vector<16x8xf32>
    %24 = vector.extract_strided_slice %4 {offsets = [0, 8], sizes = [16, 8], strides = [1, 1]} : vector<16x64xbf16> to vector<16x8xbf16>
    %25 = vector.extract_strided_slice %7 {offsets = [0, 8], sizes = [16, 8], strides = [1, 1]} : vector<16x128xbf16> to vector<16x8xbf16>
    %26 = vector.extract_strided_slice %7 {offsets = [0, 72], sizes = [16, 8], strides = [1, 1]} : vector<16x128xbf16> to vector<16x8xbf16>
    %cst_12 = arith.constant dense<0.000000e+00> : vector<16x16xf32>
    %27 = tpu.matmul %24, %25, %cst_12 {dimension_numbers = #tpu.dot_dimension_numbers<[1], [1], [0], [0], [0, 0, 1, 0], [], []>} : vector<16x8xbf16>, vector<16x8xbf16>, vector<16x16xf32> -> vector<16x16xf32>
    %cst_13 = arith.constant dense<0xFF800000> : vector<16xf32>
    %28 = vector.multi_reduction <maximumf>, %27, %cst_13 [1] : vector<16x16xf32> to vector<16xf32>
    %29 = vector.shape_cast %28 : vector<16xf32> to vector<16x1xf32>
    %30 = vector.broadcast %29 : vector<16x1xf32> to vector<16x16xf32>
    %31 = arith.subf %27, %30 : vector<16x16xf32>
    %32 = math.exp %31 : vector<16x16xf32>
    %cst_14 = arith.constant dense<0.000000e+00> : vector<16xf32>
    %33 = vector.multi_reduction <add>, %32, %cst_14 [1] : vector<16x16xf32> to vector<16xf32>
    %34 = vector.shape_cast %33 : vector<16xf32> to vector<16x1xf32>
    %35 = arith.truncf %32 : vector<16x16xf32> to vector<16x16xbf16>
    %cst_15 = arith.constant dense<0.000000e+00> : vector<16x8xf32>
    %36 = tpu.matmul %35, %26, %cst_15 {dimension_numbers = #tpu.dot_dimension_numbers<[1], [0], [0], [1], [0, 0, 1, 1], [], []>} : vector<16x16xbf16>, vector<16x8xbf16>, vector<16x8xf32> -> vector<16x8xf32>
    %37 = tpu.reciprocal %34 {approx = true} : vector<16x1xf32> -> vector<16x1xf32>
    %38 = vector.broadcast %37 : vector<16x1xf32> to vector<16x8xf32>
    %39 = arith.mulf %36, %38 : vector<16x8xf32>
    %40 = vector.extract_strided_slice %4 {offsets = [0, 16], sizes = [16, 8], strides = [1, 1]} : vector<16x64xbf16> to vector<16x8xbf16>
    %41 = vector.extract_strided_slice %7 {offsets = [0, 16], sizes = [16, 8], strides = [1, 1]} : vector<16x128xbf16> to vector<16x8xbf16>
    %42 = vector.extract_strided_slice %7 {offsets = [0, 80], sizes = [16, 8], strides = [1, 1]} : vector<16x128xbf16> to vector<16x8xbf16>
    %cst_16 = arith.constant dense<0.000000e+00> : vector<16x16xf32>
    %43 = tpu.matmul %40, %41, %cst_16 {dimension_numbers = #tpu.dot_dimension_numbers<[1], [1], [0], [0], [0, 0, 1, 0], [], []>} : vector<16x8xbf16>, vector<16x8xbf16>, vector<16x16xf32> -> vector<16x16xf32>
    %cst_17 = arith.constant dense<0xFF800000> : vector<16xf32>
    %44 = vector.multi_reduction <maximumf>, %43, %cst_17 [1] : vector<16x16xf32> to vector<16xf32>
    %45 = vector.shape_cast %44 : vector<16xf32> to vector<16x1xf32>
    %46 = vector.broadcast %45 : vector<16x1xf32> to vector<16x16xf32>
    %47 = arith.subf %43, %46 : vector<16x16xf32>
    %48 = math.exp %47 : vector<16x16xf32>
    %cst_18 = arith.constant dense<0.000000e+00> : vector<16xf32>
    %49 = vector.multi_reduction <add>, %48, %cst_18 [1] : vector<16x16xf32> to vector<16xf32>
    %50 = vector.shape_cast %49 : vector<16xf32> to vector<16x1xf32>
    %51 = arith.truncf %48 : vector<16x16xf32> to vector<16x16xbf16>
    %cst_19 = arith.constant dense<0.000000e+00> : vector<16x8xf32>
    %52 = tpu.matmul %51, %42, %cst_19 {dimension_numbers = #tpu.dot_dimension_numbers<[1], [0], [0], [1], [0, 0, 1, 1], [], []>} : vector<16x16xbf16>, vector<16x8xbf16>, vector<16x8xf32> -> vector<16x8xf32>
    %53 = tpu.reciprocal %50 {approx = true} : vector<16x1xf32> -> vector<16x1xf32>
    %54 = vector.broadcast %53 : vector<16x1xf32> to vector<16x8xf32>
    %55 = arith.mulf %52, %54 : vector<16x8xf32>
    %56 = vector.extract_strided_slice %4 {offsets = [0, 24], sizes = [16, 8], strides = [1, 1]} : vector<16x64xbf16> to vector<16x8xbf16>
    %57 = vector.extract_strided_slice %7 {offsets = [0, 24], sizes = [16, 8], strides = [1, 1]} : vector<16x128xbf16> to vector<16x8xbf16>
    %58 = vector.extract_strided_slice %7 {offsets = [0, 88], sizes = [16, 8], strides = [1, 1]} : vector<16x128xbf16> to vector<16x8xbf16>
    %cst_20 = arith.constant dense<0.000000e+00> : vector<16x16xf32>
    %59 = tpu.matmul %56, %57, %cst_20 {dimension_numbers = #tpu.dot_dimension_numbers<[1], [1], [0], [0], [0, 0, 1, 0], [], []>} : vector<16x8xbf16>, vector<16x8xbf16>, vector<16x16xf32> -> vector<16x16xf32>
    %cst_21 = arith.constant dense<0xFF800000> : vector<16xf32>
    %60 = vector.multi_reduction <maximumf>, %59, %cst_21 [1] : vector<16x16xf32> to vector<16xf32>
    %61 = vector.shape_cast %60 : vector<16xf32> to vector<16x1xf32>
    %62 = vector.broadcast %61 : vector<16x1xf32> to vector<16x16xf32>
    %63 = arith.subf %59, %62 : vector<16x16xf32>
    %64 = math.exp %63 : vector<16x16xf32>
    %cst_22 = arith.constant dense<0.000000e+00> : vector<16xf32>
    %65 = vector.multi_reduction <add>, %64, %cst_22 [1] : vector<16x16xf32> to vector<16xf32>
    %66 = vector.shape_cast %65 : vector<16xf32> to vector<16x1xf32>
    %67 = arith.truncf %64 : vector<16x16xf32> to vector<16x16xbf16>
    %cst_23 = arith.constant dense<0.000000e+00> : vector<16x8xf32>
    %68 = tpu.matmul %67, %58, %cst_23 {dimension_numbers = #tpu.dot_dimension_numbers<[1], [0], [0], [1], [0, 0, 1, 1], [], []>} : vector<16x16xbf16>, vector<16x8xbf16>, vector<16x8xf32> -> vector<16x8xf32>
    %69 = tpu.reciprocal %66 {approx = true} : vector<16x1xf32> -> vector<16x1xf32>
    %70 = vector.broadcast %69 : vector<16x1xf32> to vector<16x8xf32>
    %71 = arith.mulf %68, %70 : vector<16x8xf32>
    %72 = vector.extract_strided_slice %4 {offsets = [0, 32], sizes = [16, 8], strides = [1, 1]} : vector<16x64xbf16> to vector<16x8xbf16>
    %73 = vector.extract_strided_slice %7 {offsets = [0, 32], sizes = [16, 8], strides = [1, 1]} : vector<16x128xbf16> to vector<16x8xbf16>
    %74 = vector.extract_strided_slice %7 {offsets = [0, 96], sizes = [16, 8], strides = [1, 1]} : vector<16x128xbf16> to vector<16x8xbf16>
    %cst_24 = arith.constant dense<0.000000e+00> : vector<16x16xf32>
    %75 = tpu.matmul %72, %73, %cst_24 {dimension_numbers = #tpu.dot_dimension_numbers<[1], [1], [0], [0], [0, 0, 1, 0], [], []>} : vector<16x8xbf16>, vector<16x8xbf16>, vector<16x16xf32> -> vector<16x16xf32>
    %cst_25 = arith.constant dense<0xFF800000> : vector<16xf32>
    %76 = vector.multi_reduction <maximumf>, %75, %cst_25 [1] : vector<16x16xf32> to vector<16xf32>
    %77 = vector.shape_cast %76 : vector<16xf32> to vector<16x1xf32>
    %78 = vector.broadcast %77 : vector<16x1xf32> to vector<16x16xf32>
    %79 = arith.subf %75, %78 : vector<16x16xf32>
    %80 = math.exp %79 : vector<16x16xf32>
    %cst_26 = arith.constant dense<0.000000e+00> : vector<16xf32>
    %81 = vector.multi_reduction <add>, %80, %cst_26 [1] : vector<16x16xf32> to vector<16xf32>
    %82 = vector.shape_cast %81 : vector<16xf32> to vector<16x1xf32>
    %83 = arith.truncf %80 : vector<16x16xf32> to vector<16x16xbf16>
    %cst_27 = arith.constant dense<0.000000e+00> : vector<16x8xf32>
    %84 = tpu.matmul %83, %74, %cst_27 {dimension_numbers = #tpu.dot_dimension_numbers<[1], [0], [0], [1], [0, 0, 1, 1], [], []>} : vector<16x16xbf16>, vector<16x8xbf16>, vector<16x8xf32> -> vector<16x8xf32>
    %85 = tpu.reciprocal %82 {approx = true} : vector<16x1xf32> -> vector<16x1xf32>
    %86 = vector.broadcast %85 : vector<16x1xf32> to vector<16x8xf32>
    %87 = arith.mulf %84, %86 : vector<16x8xf32>
    %88 = vector.extract_strided_slice %4 {offsets = [0, 40], sizes = [16, 8], strides = [1, 1]} : vector<16x64xbf16> to vector<16x8xbf16>
    %89 = vector.extract_strided_slice %7 {offsets = [0, 40], sizes = [16, 8], strides = [1, 1]} : vector<16x128xbf16> to vector<16x8xbf16>
    %90 = vector.extract_strided_slice %7 {offsets = [0, 104], sizes = [16, 8], strides = [1, 1]} : vector<16x128xbf16> to vector<16x8xbf16>
    %cst_28 = arith.constant dense<0.000000e+00> : vector<16x16xf32>
    %91 = tpu.matmul %88, %89, %cst_28 {dimension_numbers = #tpu.dot_dimension_numbers<[1], [1], [0], [0], [0, 0, 1, 0], [], []>} : vector<16x8xbf16>, vector<16x8xbf16>, vector<16x16xf32> -> vector<16x16xf32>
    %cst_29 = arith.constant dense<0xFF800000> : vector<16xf32>
    %92 = vector.multi_reduction <maximumf>, %91, %cst_29 [1] : vector<16x16xf32> to vector<16xf32>
    %93 = vector.shape_cast %92 : vector<16xf32> to vector<16x1xf32>
    %94 = vector.broadcast %93 : vector<16x1xf32> to vector<16x16xf32>
    %95 = arith.subf %91, %94 : vector<16x16xf32>
    %96 = math.exp %95 : vector<16x16xf32>
    %cst_30 = arith.constant dense<0.000000e+00> : vector<16xf32>
    %97 = vector.multi_reduction <add>, %96, %cst_30 [1] : vector<16x16xf32> to vector<16xf32>
    %98 = vector.shape_cast %97 : vector<16xf32> to vector<16x1xf32>
    %99 = arith.truncf %96 : vector<16x16xf32> to vector<16x16xbf16>
    %cst_31 = arith.constant dense<0.000000e+00> : vector<16x8xf32>
    %100 = tpu.matmul %99, %90, %cst_31 {dimension_numbers = #tpu.dot_dimension_numbers<[1], [0], [0], [1], [0, 0, 1, 1], [], []>} : vector<16x16xbf16>, vector<16x8xbf16>, vector<16x8xf32> -> vector<16x8xf32>
    %101 = tpu.reciprocal %98 {approx = true} : vector<16x1xf32> -> vector<16x1xf32>
    %102 = vector.broadcast %101 : vector<16x1xf32> to vector<16x8xf32>
    %103 = arith.mulf %100, %102 : vector<16x8xf32>
    %104 = vector.extract_strided_slice %4 {offsets = [0, 48], sizes = [16, 8], strides = [1, 1]} : vector<16x64xbf16> to vector<16x8xbf16>
    %105 = vector.extract_strided_slice %7 {offsets = [0, 48], sizes = [16, 8], strides = [1, 1]} : vector<16x128xbf16> to vector<16x8xbf16>
    %106 = vector.extract_strided_slice %7 {offsets = [0, 112], sizes = [16, 8], strides = [1, 1]} : vector<16x128xbf16> to vector<16x8xbf16>
    %cst_32 = arith.constant dense<0.000000e+00> : vector<16x16xf32>
    %107 = tpu.matmul %104, %105, %cst_32 {dimension_numbers = #tpu.dot_dimension_numbers<[1], [1], [0], [0], [0, 0, 1, 0], [], []>} : vector<16x8xbf16>, vector<16x8xbf16>, vector<16x16xf32> -> vector<16x16xf32>
    %cst_33 = arith.constant dense<0xFF800000> : vector<16xf32>
    %108 = vector.multi_reduction <maximumf>, %107, %cst_33 [1] : vector<16x16xf32> to vector<16xf32>
    %109 = vector.shape_cast %108 : vector<16xf32> to vector<16x1xf32>
    %110 = vector.broadcast %109 : vector<16x1xf32> to vector<16x16xf32>
    %111 = arith.subf %107, %110 : vector<16x16xf32>
    %112 = math.exp %111 : vector<16x16xf32>
    %cst_34 = arith.constant dense<0.000000e+00> : vector<16xf32>
    %113 = vector.multi_reduction <add>, %112, %cst_34 [1] : vector<16x16xf32> to vector<16xf32>
    %114 = vector.shape_cast %113 : vector<16xf32> to vector<16x1xf32>
    %115 = arith.truncf %112 : vector<16x16xf32> to vector<16x16xbf16>
    %cst_35 = arith.constant dense<0.000000e+00> : vector<16x8xf32>
    %116 = tpu.matmul %115, %106, %cst_35 {dimension_numbers = #tpu.dot_dimension_numbers<[1], [0], [0], [1], [0, 0, 1, 1], [], []>} : vector<16x16xbf16>, vector<16x8xbf16>, vector<16x8xf32> -> vector<16x8xf32>
    %117 = tpu.reciprocal %114 {approx = true} : vector<16x1xf32> -> vector<16x1xf32>
    %118 = vector.broadcast %117 : vector<16x1xf32> to vector<16x8xf32>
    %119 = arith.mulf %116, %118 : vector<16x8xf32>
    %120 = vector.extract_strided_slice %4 {offsets = [0, 56], sizes = [16, 8], strides = [1, 1]} : vector<16x64xbf16> to vector<16x8xbf16>
    %121 = vector.extract_strided_slice %7 {offsets = [0, 56], sizes = [16, 8], strides = [1, 1]} : vector<16x128xbf16> to vector<16x8xbf16>
    %122 = vector.extract_strided_slice %7 {offsets = [0, 120], sizes = [16, 8], strides = [1, 1]} : vector<16x128xbf16> to vector<16x8xbf16>
    %cst_36 = arith.constant dense<0.000000e+00> : vector<16x16xf32>
    %123 = tpu.matmul %120, %121, %cst_36 {dimension_numbers = #tpu.dot_dimension_numbers<[1], [1], [0], [0], [0, 0, 1, 0], [], []>} : vector<16x8xbf16>, vector<16x8xbf16>, vector<16x16xf32> -> vector<16x16xf32>
    %cst_37 = arith.constant dense<0xFF800000> : vector<16xf32>
    %124 = vector.multi_reduction <maximumf>, %123, %cst_37 [1] : vector<16x16xf32> to vector<16xf32>
    %125 = vector.shape_cast %124 : vector<16xf32> to vector<16x1xf32>
    %126 = vector.broadcast %125 : vector<16x1xf32> to vector<16x16xf32>
    %127 = arith.subf %123, %126 : vector<16x16xf32>
    %128 = math.exp %127 : vector<16x16xf32>
    %cst_38 = arith.constant dense<0.000000e+00> : vector<16xf32>
    %129 = vector.multi_reduction <add>, %128, %cst_38 [1] : vector<16x16xf32> to vector<16xf32>
    %130 = vector.shape_cast %129 : vector<16xf32> to vector<16x1xf32>
    %131 = arith.truncf %128 : vector<16x16xf32> to vector<16x16xbf16>
    %cst_39 = arith.constant dense<0.000000e+00> : vector<16x8xf32>
    %132 = tpu.matmul %131, %122, %cst_39 {dimension_numbers = #tpu.dot_dimension_numbers<[1], [0], [0], [1], [0, 0, 1, 1], [], []>} : vector<16x16xbf16>, vector<16x8xbf16>, vector<16x8xf32> -> vector<16x8xf32>
    %133 = tpu.reciprocal %130 {approx = true} : vector<16x1xf32> -> vector<16x1xf32>
    %134 = vector.broadcast %133 : vector<16x1xf32> to vector<16x8xf32>
    %135 = arith.mulf %132, %134 : vector<16x8xf32>
    %136 = tpu.concatenate %23, %39, %55, %71, %87, %103, %119, %135 in 1 : vector<16x8xf32>, vector<16x8xf32>, vector<16x8xf32>, vector<16x8xf32>, vector<16x8xf32>, vector<16x8xf32>, vector<16x8xf32>, vector<16x8xf32> -> vector<16x64xf32>
    %137 = arith.truncf %136 : vector<16x64xf32> to vector<16x64xbf16>
    %c0_40 = arith.constant 0 : index
    %c0_41 = arith.constant 0 : index
    %138 = vector.load %arg5[%c0_40, %c0_41] : memref<64x64xbf16, #tpu.memory_space<vmem>>, vector<64x64xbf16>
    %cst_42 = arith.constant dense<0.000000e+00> : vector<16x64xf32>
    %139 = tpu.matmul %137, %138, %cst_42 {dimension_numbers = #tpu.dot_dimension_numbers<[1], [0], [0], [1], [0, 0, 1, 1], [], []>} : vector<16x64xbf16>, vector<64x64xbf16>, vector<16x64xf32> -> vector<16x64xf32>
    %c0_43 = arith.constant 0 : index
    %c0_44 = arith.constant 0 : index
    %140 = vector.load %arg6[%c0_43, %c0_44] : memref<1x64xf32, #tpu.memory_space<vmem>>, vector<1x64xf32>
    %141 = vector.broadcast %140 : vector<1x64xf32> to vector<16x64xf32>
    %142 = arith.addf %139, %141 : vector<16x64xf32>
    %c0_45 = arith.constant 0 : index
    %c0_46 = arith.constant 0 : index
    %143 = vector.load %arg7[%c0_45, %c0_46] : memref<16x64xf32, #tpu.memory_space<vmem>>, vector<16x64xf32>
    tpu.vector_store %arg7[%c0_45, %c0_46], %142 {strides = array<i32>} : memref<16x64xf32, #tpu.memory_space<vmem>>, vector<16x64xf32>,
    return
  }
  func.func @transform_0(%arg0: i32) -> (i32, i32) {
    %c0_i32 = arith.constant 0 : i32
    %c0_i32_0 = arith.constant 0 : i32
    return %arg0, %c0_i32 : i32, i32
  }
  func.func @transform_1(%arg0: i32) -> (i32, i32) {
    %c0_i32 = arith.constant 0 : i32
    %c0_i32_0 = arith.constant 0 : i32
    return %arg0, %c0_i32 : i32, i32
  }
  func.func @transform_2(%arg0: i32) -> (i32, i32) {
    %c0_i32 = arith.constant 0 : i32
    %c0_i32_0 = arith.constant 0 : i32
    %c0_i32_1 = arith.constant 0 : i32
    return %c0_i32, %c0_i32_0 : i32, i32
  }
  func.func @transform_3(%arg0: i32) -> (i32, i32) {
    %c0_i32 = arith.constant 0 : i32
    %c0_i32_0 = arith.constant 0 : i32
    %c0_i32_1 = arith.constant 0 : i32
    return %c0_i32, %c0_i32_0 : i32, i32
  }
  func.func @transform_4(%arg0: i32) -> (i32, i32) {
    %c0_i32 = arith.constant 0 : i32
    %c0_i32_0 = arith.constant 0 : i32
    %c0_i32_1 = arith.constant 0 : i32
    return %c0_i32, %c0_i32_0 : i32, i32
  }
  func.func @transform_5(%arg0: i32) -> (i32, i32) {
    %c0_i32 = arith.constant 0 : i32
    %c0_i32_0 = arith.constant 0 : i32
    %c0_i32_1 = arith.constant 0 : i32
    return %c0_i32, %c0_i32_0 : i32, i32
  }
  func.func @transform_6(%arg0: i32) -> (i32, i32) {
    %c0_i32 = arith.constant 0 : i32
    %c0_i32_0 = arith.constant 0 : i32
    return %arg0, %c0_i32 : i32, i32
  }
}

</mosaic_0001>

<bundles_post_ra>
// kernel: tpu_custom_call.1
= control target key start
LH: loop header
LB: loop body
LE: loop exit
PB: predicated region body
PF: predicated region fallthrough
CT: control target
= control target key end

     0   :  { %s3103_s0 = inlined_call_operand.hbm [shape: bf16[32,64], index: 0, kind: input, shape index: {}]   ;;  %s3104_s1 = inlined_call_operand.hbm [shape: bf16[32,64], index: 1, kind: input, shape index: {}]   ;;  %s3105_s2 = inlined_call_operand.hbm [shape: bf16[64,64], index: 2, kind: input, shape index: {}]   ;;  %s3106_s3 = inlined_call_operand.hbm [shape: bf16[64,128], index: 3, kind: input, shape index: {}]   ;;  %s3107_s4 = inlined_call_operand.hbm [shape: bf16[64,64], index: 4, kind: input, shape index: {}]   ;;  %s3108_s5 = inlined_call_operand.vmem [shape: f32[1,64], index: 5, kind: input, shape index: {}]   ;;  %s3109_s6 = inlined_call_operand.hbm [shape: f32[32,64], index: 6, kind: output, shape index: {}]  }
   0x1   :  { %3117 = sst [smem:[#allocation18_spill]] %s3103_s0 }
   0x2   :  { %3118 = sst [smem:[#allocation19_spill]] %s3105_s2 }
   0x3   :  { %3119 = sst [smem:[#allocation20_spill]] %s3106_s3 }
   0x4   :  { %3120 = sst [smem:[#allocation21_spill]] %s3107_s4 }
   0x5   :  { %11 = vsyncpa [#allocation3], 0 }
   0x6   :  { %13 = vsyncpa [#allocation3 + $0x1], 0 }
   0x7   :  { %14 = vsyncpa [#allocation6], 0 }
   0x8   :  { %16 = vsyncpa [#allocation6 + $0x1], 0 }
   0x9   :  { %17 = vsyncpa [#allocation9], 0 }
   0xa   :  { %18 = vsyncpa [#allocation4], 0 }
   0xb   :  { %20 = vsyncpa [#allocation4 + $0x1], 0  ;;  %s2533_s21 = smov 0   ;;  %s2535_s22 = smov 0  }
   0xc   :  { %s2537_s23 = smov 0   ;;  %s2539_s24 = smov 0  }
   0xd LB: > { %s2554_s25 = sadd.s32 4294967295, %s2470_s24   ;;  %s1793_s26 = sadd.s32 4294967294, %s2470_s24   ;;  %s2470_s24 = sphi %s2539_s24, %s3148_s24   ;;  %s2466_s23 = sphi %s2537_s23, %s3147_s23   ;;  %s2462_s22 = sphi %s2535_s22, %s3146_s22   ;;  %s2458_s21 = sphi %s2533_s21, %s3145_s21  }
   0xe   : > { %p46_p0 = scmp.ne.s32.totalorder %s2462_s22, %s2458_s21  ;;  %p3110_p1 = scmp.eq.s32.totalorder %s2554_s25, 0 }
   0xf   : > { %p186_p3 = scmp.eq.s32.totalorder %s1793_s26, 1  ;;  %p1794_p5 = scmp.ge.s32.totalorder %s2470_s24, 1 }
  0x10   : > { %p2563_p4 = por %p3110_p1, %p46_p0  ;;  %p193_p7 = scmp.lt.s32.totalorder %s2470_s24, 3 }
  0x11   : > { %p2568_p6 = por %p186_p3, %p46_p0  ;;  %s2472_s30 = smov [#allocation7]  }
  0x12   : > { %s3121_s27 = scalar_select %p2563_p4, 1, 0 }
  0x13   : > { %s3122_s28 = scalar_select %p2568_p6, 1, 0 }
  0x14   : > { %p2573_p8 = pnand %p1794_p5, %p193_p7  ;;  %s205_s7 = sshll.u32 %s2472_s30, 4  ;;  %s2577_s7 = int_to_ptr.vmem [resolvable:$true] %s205_s7 }
  0x15   : > { %s2473_s9 = smov [#allocation8]   ;;  %s2474_s11 = smov [#allocation10]  }
  0x16   : > { %s3123_s29 = scalar_select %p2573_p8, 1, 0 }
  0x17   : > { %p2051_p9 = pneg %p2573_p8  ;;  %s218_s10 = sshll.u32 %s2473_s9, 4  ;;  %s2588_s10 = int_to_ptr.vmem [resolvable:$true] %s218_s10 }
  0x18   : > { %s2590_s12 = sshll.u32 %s2474_s11, 4  ;;  %s3125_s2 = sld [smem:[#allocation19_spill]]  ;;  %s232_s12 = int_to_ptr.vmem [resolvable:$true] %s2590_s12 }
  0x19   : > { %p2584_p11 = pnand %p2051_p9, %p3110_p1 }
  0x1b   : > { %p2600_p13 = pneg %p2584_p11 }
  0x1e   : > { %s2248_s15 = scalar_lea.hbm %s3125_s2, 512 }
  0x1f   : > { %p2249_p12 = scmp.ne.s32.totalorder %s3125_s2, %s2248_s15  ;;  %p2255_p5 = scmp.lt.u32.totalorder %s2248_s15, %s3125_s2 }
  0x21   : > { %p2251_p0 = pnand %p2600_p13, %p2249_p12 }
  0x23   : > { %p2252_p3 = pneg %p2251_p0 }
  0x25   : > { %p2257_p7 = pnand %p2255_p5, %p2252_p3 }
  0x27   : > { %2260 = shalt.err (!%p2257_p7)
}
  0x28   : > { %s2261_s26 = scalar_lea.vmem %s2577_s7, 512  ;;  %p2269_p2 = scmp.lt.s32.totalorder %s2577_s7, %s2577_s7 }
  0x29   : > { %p2262_p9 = scmp.ne.s32.totalorder %s2577_s7, %s2261_s26  ;;  %p2270_p6 = scmp.lt.s32.totalorder %s2261_s26, %s2261_s26 }
  0x2b   : > { %p2264_p10 = pnand %p2262_p9, %p2600_p13  ;;  %p2271_p12 = por %p2270_p6, %p2269_p2 }
  0x2d   : > { %p2265_p1 = pneg %p2264_p10 }
  0x2f   : > { %p2272_p0 = pnand %p2271_p12, %p2265_p1 }
  0x31   : > { %2275 = shalt.err (!%p2272_p0)
}
  0x32   : > { %s3113_s30 = smov 64   ;;  %s3115_s9 = smov 4  }
  0x33   : > { %2054 = dma.hbm_to_vmem [thread:$0]  (!%p2584_p11), %s3125_s2, 512, %s2577_s7, [#allocation6], %s3113_s30, %s3113_s30, %s3115_s9  }
  0x34   : > { %s3127_s3 = sld [smem:[#allocation20_spill]] }
  0x3a   : > { %s2276_s16 = scalar_lea.hbm %s3127_s3, 512 }
  0x3b   : > { %p2277_p1 = scmp.ne.s32.totalorder %s3127_s3, %s2276_s16  ;;  %p2283_p10 = scmp.lt.u32.totalorder %s2276_s16, %s3127_s3 }
  0x3d   : > { %p2279_p2 = pnand %p2277_p1, %p2600_p13 }
  0x3f   : > { %p2280_p6 = pneg %p2279_p2 }
  0x41   : > { %p2285_p3 = pnand %p2283_p10, %p2280_p6 }
  0x43   : > { %2288 = shalt.err (!%p2285_p3)
}
  0x44   : > { %s2289_s7 = scalar_lea.vmem %s2588_s10, 512  ;;  %p2297_p12 = scmp.lt.s32.totalorder %s2588_s10, %s2588_s10 }
  0x45   : > { %p2290_p5 = scmp.ne.s32.totalorder %s2588_s10, %s2289_s7  ;;  %p2298_p0 = scmp.lt.s32.totalorder %s2289_s7, %s2289_s7 }
  0x47   : > { %p2292_p7 = pnand %p2290_p5, %p2600_p13  ;;  %p2299_p1 = por %p2298_p0, %p2297_p12 }
  0x49   : > { %p2293_p9 = pneg %p2292_p7 }
  0x4b   : > { %p2300_p2 = pnand %p2299_p1, %p2293_p9 }
  0x4d   : > { %2303 = shalt.err (!%p2300_p2)
}
  0x4e   : > { %2057 = dma.hbm_to_vmem [thread:$0]  (!%p2584_p11), %s3127_s3, 512, %s2588_s10, [#allocation9], %s3113_s30, %s3113_s30, %s3115_s9  }
  0x4f   : > { %s3128_s4 = sld [smem:[#allocation21_spill]] }
  0x55   : > { %s2304_s16 = scalar_lea.hbm %s3128_s4, 512 }
  0x56   : > { %p2305_p6 = scmp.ne.s32.totalorder %s3128_s4, %s2304_s16  ;;  %p2311_p5 = scmp.lt.u32.totalorder %s2304_s16, %s3128_s4 }
  0x58   : > { %p2307_p10 = pnand %p2305_p6, %p2600_p13 }
  0x5a   : > { %p2308_p3 = pneg %p2307_p10 }
  0x5c   : > { %p2313_p7 = pnand %p2311_p5, %p2308_p3 }
  0x5e   : > { %2316 = shalt.err (!%p2313_p7)
}
  0x5f   : > { %s2317_s7 = scalar_lea.vmem %s232_s12, 512  ;;  %p2325_p1 = scmp.lt.s32.totalorder %s232_s12, %s232_s12 }
  0x60   : > { %p2318_p9 = scmp.ne.s32.totalorder %s232_s12, %s2317_s7  ;;  %p2326_p2 = scmp.lt.s32.totalorder %s2317_s7, %s2317_s7 }
  0x62   : > { %p2320_p12 = pnand %p2318_p9, %p2600_p13  ;;  %p2327_p4 = por %p2326_p2, %p2325_p1 }
  0x64   : > { %p2321_p0 = pneg %p2320_p12 }
  0x66   : > { %p2328_p8 = pnand %p2327_p4, %p2321_p0 }
  0x68   : > { %2331 = shalt.err (!%p2328_p8)
}
  0x69   : > { %2060 = dma.hbm_to_vmem [thread:$0]  (!%p2584_p11), %s3128_s4, 512, %s232_s12, [#allocation9], %s3113_s30, %s3113_s30, %s3115_s9  }
  0x6a   : > { %s2673_s18 = sadd.s32 1, %s2470_s24   ;;  %s33_s13 = sadd.s32 1, %s2466_s23 }
  0x6b   : > { %s30_s8 = ssub.s32 %s2470_s24, %s2673_s18  ;;  %p40_p8 = scmp.ne.s32.totalorder %s2466_s23, %s2462_s22 }
  0x6c   : > { %p31_p4 = scmp.eq.s32.totalorder %s30_s8, 0  ;;  %p41_p13 = scmp.eq.s32.totalorder %s2470_s24, 0 }
  0x6d   : > { %p2075_p6 = scmp.lt.s32.totalorder %s2470_s24, 2  ;;  %p3130_p3 = scmp.eq.s32.totalorder %s2554_s25, 1 }
  0x6e   : > { %s2683_s14 = scalar_select %p31_p4, %s2466_s23, %s33_s13  }
  0x6f   : > { %p42_p10 = por %p41_p13, %p40_p8  ;;  %p2687_p5 = por %p3130_p3, %p40_p8 }
  0x70   : > { %3129 = sst [smem:[#allocation17_spill]] %s2683_s14  ;;  %s248_s16 = sand.u32 1, %s2466_s23  }
  0x71   : > { %s1851_s17 = sshll.u32 %s2470_s24, 7  ;;  %s2693_s12 = sshll.u32 %s248_s16, 3 }
  0x72   : > { %s3132_s0 = sld [smem:[#allocation18_spill]]  ;;  %s252_s7 = scalar_lea.vmem [#allocation2], %s2693_s12 }
  0x73   : > { %s259_s10 = sshll.u32 %s252_s7, 4  ;;  %p2701_p11 = pnand %p2075_p6, %p42_p10  ;;  %s2705_s10 = int_to_ptr.vmem [resolvable:$true] %s259_s10 }
  0x74   : > { %s2710_s19 = scalar_lea.hbm %s3104_s1, %s1851_s17  ;;  %s2712_s20 = scalar_lea.sflag [#allocation3], %s248_s16 }
  0x75   : > { %p2334_p9 = pneg %p2701_p11 }
  0x78   : > { %s2698_s26 = scalar_lea.hbm %s3132_s0, %s1851_s17  ;;  %s2337_s2 = scalar_lea.hbm %s3132_s0, 256 }
  0x79   : > { %s2332_s30 = scalar_lea.hbm %s2698_s26, 128  ;;  %p2338_p1 = scmp.lt.u32.totalorder %s2698_s26, %s3132_s0 }
  0x7a   : > { %p2333_p7 = scmp.ne.s32.totalorder %s2698_s26, %s2332_s30  ;;  %p2339_p2 = scmp.lt.u32.totalorder %s2337_s2, %s2332_s30 }
  0x7b   : > { %p2341_p8 = scmp.lt.u32.totalorder %s2332_s30, %s2698_s26 }
  0x7c   : > { %p2335_p12 = pnand %p2334_p9, %p2333_p7  ;;  %p2340_p4 = por %p2339_p2, %p2338_p1 }
  0x7e   : > { %p2336_p0 = pneg %p2335_p12  ;;  %p2342_p13 = por %p2341_p8, %p2340_p4 }
  0x80   : > { %p2343_p6 = pnand %p2342_p13, %p2336_p0 }
  0x82   : > { %2346 = shalt.err (!%p2343_p6)
}
  0x83   : > { %s2347_s16 = scalar_lea.vmem %s2705_s10, 128  ;;  %s2477_s9 = smov [#allocation2]  }
  0x84   : > { %p2348_p10 = scmp.ne.s32.totalorder %s2705_s10, %s2347_s16  ;;  %s2352_s17 = sshll.u32 %s2477_s9, 4  ;;  %s2353_s17 = int_to_ptr.vmem [resolvable:$false] %s2352_s17 }
  0x85   : > { %s2354_s3 = scalar_lea.vmem %s2353_s17, 256  ;;  %p2355_p12 = scmp.lt.s32.totalorder %s2705_s10, %s2353_s17 }
  0x86   : > { %p2350_p3 = pnand %p2348_p10, %p2334_p9  ;;  %p2356_p1 = scmp.lt.s32.totalorder %s2354_s3, %s2347_s16 }
  0x88   : > { %p2351_p7 = pneg %p2350_p3  ;;  %p2357_p2 = por %p2356_p1, %p2355_p12 }
  0x8a   : > { %p2358_p4 = pnand %p2357_p2, %p2351_p7 }
  0x8c   : > { %2361 = shalt.err (!%p2358_p4)
}
  0x8d   : > { %s3134_s2 = smov 4   ;;  %s3135_s4 = smov 64  }
  0x8e   : > { %2064 = dma.hbm_to_vmem [thread:$0]  (!%p2701_p11), %s2698_s26, 128, %s2705_s10, %s2712_s20, %s3135_s4, %s3135_s4, %s3134_s2  }
  0x8f   : > { %s273_s30 = scalar_lea.vmem [#allocation5], %s2693_s12  ;;  %s269_s13 = sand.u32 1, %s2470_s24  }
  0x90   : > { %s280_s8 = sshll.u32 %s273_s30, 4  ;;  %s2747_s7 = scalar_lea.sflag [#allocation6], %s269_s13  ;;  %s2745_s8 = int_to_ptr.vmem [resolvable:$true] %s280_s8 }
  0x91   : > { %s2362_s16 = scalar_lea.hbm %s2710_s19, 128  ;;  %s2367_s3 = scalar_lea.hbm %s3104_s1, 256 }
  0x92   : > { %p2363_p0 = scmp.ne.s32.totalorder %s2710_s19, %s2362_s16  ;;  %p2368_p6 = scmp.lt.u32.totalorder %s2710_s19, %s3104_s1 }
  0x93   : > { %p2369_p10 = scmp.lt.u32.totalorder %s2367_s3, %s2362_s16  ;;  %p2371_p7 = scmp.lt.u32.totalorder %s2362_s16, %s2710_s19 }
  0x94   : > { %p2365_p8 = pnand %p2363_p0, %p2334_p9 }
  0x95   : > { %p2370_p3 = por %p2369_p10, %p2368_p6 }
  0x96   : > { %p2366_p13 = pneg %p2365_p8 }
  0x97   : > { %p2372_p12 = por %p2371_p7, %p2370_p3 }
  0x99   : > { %p2373_p1 = pnand %p2372_p12, %p2366_p13 }
  0x9b   : > { %2376 = shalt.err (!%p2373_p1)
}
  0x9c   : > { %s2377_s12 = scalar_lea.vmem %s2745_s8, 128  ;;  %s2478_s26 = smov [#allocation5]  }
  0x9d   : > { %p2378_p2 = scmp.ne.s32.totalorder %s2745_s8, %s2377_s12  ;;  %s2382_s10 = sshll.u32 %s2478_s26, 4  ;;  %s2383_s10 = int_to_ptr.vmem [resolvable:$false] %s2382_s10 }
  0x9e   : > { %s2384_s0 = scalar_lea.vmem %s2383_s10, 256  ;;  %p2385_p8 = scmp.lt.s32.totalorder %s2745_s8, %s2383_s10 }
  0x9f   : > { %p2380_p4 = pnand %p2378_p2, %p2334_p9  ;;  %p2386_p6 = scmp.lt.s32.totalorder %s2384_s0, %s2377_s12 }
  0xa1   : > { %p2381_p0 = pneg %p2380_p4  ;;  %p2387_p10 = por %p2386_p6, %p2385_p8 }
  0xa3   : > { %p2388_p3 = pnand %p2387_p10, %p2381_p0 }
  0xa5   : > { %2391 = shalt.err (!%p2388_p3)
}
  0xa6   : > { %2067 = dma.hbm_to_vmem [thread:$0]  (!%p2701_p11), %s2710_s19, 128, %s2745_s8, %s2747_s7, %s3135_s4, %s3135_s4, %s3134_s2  }
  0xa7   : > { %p3136_p9 = scmp.ne.s32.totalorder %s3123_s29, 0 }
  0xa8   : > { %s2779_s14 = sand.u32 (!%p3136_p9), 1, %s2462_s22   ;;  %p3137_p13 = scmp.ne.s32.totalorder (!%p3136_p9), %s3121_s27, 0 }
  0xa9   : > { %292 = sbr.rel (%p3136_p9) target bundleno = 1570 (0x622), region = 44  ;;  %s1806_s20 = sshll.u32 (!%p3136_p9), %s2779_s14, 3 }
  0xaa   : > { %s295_s30 = scalar_lea.sflag (!%p3136_p9), [#allocation3], %s2779_s14  ;;  %s2783_s13 = scalar_lea.vmem (!%p3136_p9), [#allocation2], %s1806_s20 }
  0xb0   : > { %2437 = dma.done.wait (%p3137_p13), %s295_s30, 128  }
  0xb1   : > { %2439 = vsyncadd (%p3137_p13), %s295_s30, 4294967168  ;;  %s303_s11 = sand.u32 1, %s2554_s25   ;;  %s2790_s19 = scalar_lea.vmem [#allocation5], %s1806_s20 }
  0xb2   : > { %s304_s29 = scalar_lea.sflag [#allocation6], %s303_s11 }
  0xb3   : > { %2441 = dma.done.wait (%p3137_p13), %s304_s29, 128  }
  0xb4   : > { %2443 = vsyncadd (%p3137_p13), %s304_s29, 4294967168  ;;  %p3138_p11 = scmp.eq.s32.totalorder %s2554_s25, 0 }
  0xb6   : > { %2445 = dma.done.wait (%p3138_p11), [#allocation6], 512   ;;  %p3139_p7 = pmov %p3138_p11 }
  0xb8   : > { %2447 = vsyncadd (%p3139_p7), [#allocation6], 4294966784  ;;  %p3140_p12 = pmov %p3139_p7 }
  0xb9   : > { %p3141_p1 = pmov %p3139_p7 }
  0xba   : > { %2449 = dma.done.wait (%p3140_p12), [#allocation9], 1024  }
  0xbb   : > { %2451 = vsyncadd (%p3141_p1), [#allocation9], 4294966272  ;;  %v2479_v0 = vmov 0.0   ;;  %vm2480_vm0 = vmmov 0   ;;  %v2170_v1 = vld [vmem:[#allocation8] sm:$0xff]   ;;  %v2172_v3 = vld [vmem:[#allocation8 + $0x8] sm:$0xff]  }
  0xbc   : > { %1913 = vmatprep.subr.bf16.mxu1 %v2479_v0  ;;  %1901 = vmatprep.subr.bf16.mxu0 %v2479_v0  ;;  %v2171_v2 = vld [vmem:[#allocation7] sm:$0xff]   ;;  %v2173_v4 = vld [vmem:[#allocation7 + $0x8] sm:$0xff]   ;;  %v2174_v5 = vld [vmem:[#allocation8 + $0x10] sm:$0xff]   ;;  %vm398_vm1 = vcmask 523264   ;;  %vm526_vm2 = vcmask 64512   ;;  %s2481_s27 = smov 112  }
  0xbd   : > { %1921 = vmatprep.mubr.msk.bf16.mxu1 %vm2480_vm0, %v2479_v0  ;;  %1909 = vmatprep.mubr.msk.bf16.mxu0 %vm2480_vm0, %v2479_v0  ;;  %v2175_v6 = vld [vmem:[#allocation7 + $0x10] sm:$0xff]   ;;  %v2176_v7 = vld [vmem:[#allocation8 + $0x18] sm:$0xff]   ;;  %v2179_v10 = vld [vmem:[%s2783_s13] sm:$0xff]   ;;  %s2482_s2 = smov 120   ;;  %s2483_s4 = smov 104   ;;  %vm574_vm3 = vcmask 130048  }
  0xbe   : > { %1914 = vmatpush3.bf16.msra.mxu1 %v2170_v1  ;;  %1902 = vmatpush3.bf16.msra.mxu0 %v2171_v2  ;;  %v2178_v8 = vld [vmem:[#allocation7 + $0x18] sm:$0xff]   ;;  %s2484_s8 = smov 96   ;;  %s2485_s7 = smov 88   ;;  %vm1554_vm4 = vcmask 195584   ;;  %vm1557_vm5 = vcmask 261120   ;;  %vm1560_vm6 = vcmask 326656  }
  0xbf   : > { %1915 = vmatprep.subr.bf16.mxu1 %v2479_v0  ;;  %1903 = vmatprep.subr.bf16.mxu0 %v2479_v0  ;;  %v2177_v9 = vld [vmem:[%s2790_s19] sm:$0xff]   ;;  %s2486_s16 = smov 80   ;;  %s2487_s9 = smov 72   ;;  %vm1563_vm7 = vcmask 392192   ;;  %vm1566_vm8 = vcmask 457728  }
  0xc0   : > { %s2488_s17 = smov 64   ;;  %s2489_s3 = smov 56  }
  0xc1   : > { %s2490_s12 = smov 48   ;;  %s2491_s26 = smov 40  }
  0xc2   : > { %1916 = vmatpush3.bf16.msra.mxu1 %v2172_v3  ;;  %1904 = vmatpush3.bf16.msra.mxu0 %v2173_v4  ;;  %s2492_s10 = smov 32   ;;  %s2493_s0 = smov 24  }
  0xc3   : > { %1917 = vmatprep.subr.bf16.mxu1 %v2479_v0  ;;  %1905 = vmatprep.subr.bf16.mxu0 %v2479_v0  ;;  %s2494_s20 = smov 16   ;;  %s2495_s30 = smov 8  }
  0xc4   : > { %s1811_s13 = sshll.u32 %s2779_s14, 4 }
  0xc5   : > { %s352_s19 = scalar_lea.vmem [#allocation11], %s1811_s13 }
  0xc6   : > { %1918 = vmatpush3.bf16.msra.mxu1 %v2174_v5  ;;  %1906 = vmatpush3.bf16.msra.mxu0 %v2175_v6 }
  0xc7   : > { %1919 = vmatprep.subr.bf16.mxu1 %v2479_v0  ;;  %1907 = vmatprep.subr.bf16.mxu0 %v2479_v0 }
  0xca   : > { %1920 = vmatpush3.bf16.msra.mxu1 %v2176_v7  ;;  %1908 = vmatpush3.bf16.msra.mxu0 %v2178_v8 }
  0xcb   : > { %1925 = vmatprep.subr.bf16.mxu1 %v2479_v0  ;;  %1937 = vmatprep.subr.bf16.mxu0 %v2479_v0 }
  0xcd   : > { %1922 = vmatmul.mubr.msk.bf16.vlgmr.msra.gmra.mrb[0].mxu1 %vm398_vm1, %v2177_v9  ;;  %1910 = vmatmul.mubr.msk.bf16.vlgmr.msra.gmra.mrb[0].mxu0 %vm398_vm1, %v2179_v10 }
  0xce   : > { %1927 = vmatprep.mubr.msk.bf16.mxu1 %vm2480_vm0, %v2479_v0  ;;  %1939 = vmatprep.mubr.msk.bf16.mxu0 %vm2480_vm0, %v2479_v0 }
 0x1a0   : > { %v518_v11 = vpop.f32.mrb[0].mxu1  ;;  %v436_v13 = vpop.f32.mrb[0].mxu0 }
 0x1a1   : > { %v1923_v12 = vpop.f32.mrb[1].mxu1  ;;  %v1911_v15 = vpop.f32.mrb[1].mxu0 }
 0x1a2   : > { %v521_v14 = vpop.f32.mrb[2].mxu1  ;;  %v439_v18 = vpop.f32.mrb[2].mxu0 }
 0x1a3   : > { %v2826_v16 = vpack.c.bf16 %v521_v14, %v518_v11  ;;  %v1924_v17 = vpop.f32.mrb[3].mxu1  ;;  %v443_v19 = vpack.c.bf16 %v439_v18, %v436_v13  ;;  %v1912_v20 = vpop.f32.mrb[3].mxu0 }
 0x1a5   : > { %770 = vrot.lane.b32.xlu1 %v2826_v16, %s2481_s27  ;;  %649 = vrot.lane.b32.xlu0 %v2826_v16, %s2482_s2  ;;  %v531_v21 = vsel %vm526_vm2, %v2826_v16, 0 }
 0x1a6   : > { %1926 = vmatpush3.bf16.xpose.msra.mxu1 %v531_v21 }
 0x1a7   : > { %1931 = vmatprep.subr.bf16.mxu1 %v2479_v0 }
 0x1a9   : > { %768 = vrot.lane.b32.xlu1 %v443_v19, %s2481_s27  ;;  %647 = vrot.lane.b32.xlu0 %v443_v19, %s2482_s2  ;;  %s1669_s27 = sshll.u32 %s352_s19, 4  ;;  %s1853_s2 = sshll.u32 %s2554_s25, 8  ;;  %s3051_s27 = int_to_ptr.vmem [resolvable:$true] %s1669_s27 }
 0x1aa   : > { %s1656_s25 = scalar_lea.sflag [#allocation4], %s2779_s14 }
 0x1ad   : > { %889 = vrot.lane.b32.xlu1 %v443_v19, %s2483_s4  ;;  %891 = vrot.lane.b32.xlu0 %v2826_v16, %s2483_s4 }
 0x1ae   : > { %1928 = vmatmul.mubr.msk.bf16.vlgmr.msra.gmra.mrb[4].mxu1 %vm526_vm2, %v443_v19 }
 0x1af   : > { %1933 = vmatprep.mubr.msk.bf16.mxu1 %vm2480_vm0, %v2479_v0 }
 0x1b1   : > { %1010 = vrot.lane.b32.xlu1 %v443_v19, %s2484_s8  ;;  %1012 = vrot.lane.b32.xlu0 %v2826_v16, %s2484_s8 }
 0x1b5   : > { %1131 = vrot.lane.b32.xlu1 %v443_v19, %s2485_s7  ;;  %1133 = vrot.lane.b32.xlu0 %v2826_v16, %s2485_s7  ;;  %s3057_s7 = scalar_lea.hbm %s3109_s6, %s1853_s2 }
 0x1b9   : > { %1252 = vrot.lane.b32.xlu1 %v443_v19, %s2486_s16  ;;  %1254 = vrot.lane.b32.xlu0 %v2826_v16, %s2486_s16  ;;  %s2392_s16 = scalar_lea.vmem %s3051_s27, 256 }
 0x1ba   : > { %p2393_p2 = scmp.ne.s32.totalorder %s3051_s27, %s2392_s16 }
 0x1bc   : > { %p2394_p4 = pnand %p2393_p2, %p2687_p5 }
 0x1bd   : > { %1373 = vrot.lane.b32.xlu1 %v443_v19, %s2487_s9  ;;  %1375 = vrot.lane.b32.xlu0 %v2826_v16, %s2487_s9  ;;  %s2496_s9 = smov [#allocation11]  }
 0x1be   : > { %p2395_p0 = pneg %p2394_p4 }
 0x1c1   : > { %595 = vrot.lane.b32.xlu1 %v2826_v16, %s2488_s17  ;;  %717 = vrot.lane.b32.xlu0 %v2826_v16, %s2489_s3  ;;  %s2396_s17 = sshll.u32 %s2496_s9, 4  ;;  %s2397_s17 = int_to_ptr.vmem [resolvable:$false] %s2396_s17 }
 0x1c2   : > { %p2399_p8 = scmp.lt.s32.totalorder %s3051_s27, %s2397_s17 }
 0x1c5   : > { %838 = vrot.lane.b32.xlu1 %v2826_v16, %s2490_s12 }
 0x217   : > { %v771_v22 = vpop.permute.xlu1 %770  ;;  %v650_v23 = vpop.permute.xlu0 %649 }
 0x218   : > { %v655_v24 = vsel %vm526_vm2, %v650_v23, 0  ;;  %v776_v28 = vsel %vm526_vm2, %v771_v22, 0 }
 0x219   : > { %1938 = vmatpush3.bf16.xpose.msra.mxu0 %v655_v24 }
 0x21a   : > { %1949 = vmatprep.subr.bf16.mxu0 %v2479_v0 }
 0x21b   : > { %v769_v25 = vpop.permute.xlu1 %768  ;;  %v648_v26 = vpop.permute.xlu0 %647 }
 0x21f   : > { %v890_v27 = vpop.permute.xlu1 %889  ;;  %v892_v30 = vpop.permute.xlu0 %891 }
 0x220   : > { %1940 = vmatmul.mubr.msk.bf16.vlgmr.msra.gmra.mrb[4].mxu0 %vm526_vm2, %v648_v26  ;;  %v897_v32 = vsel %vm526_vm2, %v892_v30, 0 }
 0x221   : > { %1950 = vmatpush3.bf16.xpose.msra.mxu0 %v776_v28  ;;  %1951 = vmatprep.mubr.msk.bf16.mxu0 %vm2480_vm0, %v2479_v0 }
 0x222   : > { %1961 = vmatprep.subr.bf16.mxu0 %v2479_v0 }
 0x223   : > { %v1011_v29 = vpop.permute.xlu1 %1010  ;;  %v1013_v34 = vpop.permute.xlu0 %1012 }
 0x224   : > { %v1018_v36 = vsel %vm526_vm2, %v1013_v34, 0 }
 0x227   : > { %v1132_v31 = vpop.permute.xlu1 %1131  ;;  %v1134_v38 = vpop.permute.xlu0 %1133 }
 0x228   : > { %1952 = vmatmul.mubr.msk.bf16.vlgmr.msra.gmra.mrb[8].mxu0 %vm526_vm2, %v769_v25  ;;  %v1139_v39 = vsel %vm526_vm2, %v1134_v38, 0 }
 0x229   : > { %1962 = vmatpush3.bf16.xpose.msra.mxu0 %v897_v32  ;;  %1963 = vmatprep.mubr.msk.bf16.mxu0 %vm2480_vm0, %v2479_v0 }
 0x22a   : > { %1973 = vmatprep.subr.bf16.mxu0 %v2479_v0 }
 0x22b   : > { %v1253_v33 = vpop.permute.xlu1 %1252  ;;  %v1255_v40 = vpop.permute.xlu0 %1254 }
 0x22c   : > { %v1260_v41 = vsel %vm526_vm2, %v1255_v40, 0 }
 0x22f   : > { %v1374_v35 = vpop.permute.xlu1 %1373  ;;  %v1376_v42 = vpop.permute.xlu0 %1375 }
 0x230   : > { %1964 = vmatmul.mubr.msk.bf16.vlgmr.msra.gmra.mrb[12].mxu0 %vm526_vm2, %v890_v27  ;;  %v1381_v43 = vsel %vm526_vm2, %v1376_v42, 0 }
 0x231   : > { %1974 = vmatpush3.bf16.xpose.msra.mxu0 %v1018_v36  ;;  %1975 = vmatprep.mubr.msk.bf16.mxu0 %vm2480_vm0, %v2479_v0 }
 0x232   : > { %1985 = vmatprep.subr.bf16.mxu0 %v2479_v0 }
 0x233   : > { %v596_v37 = vpop.permute.xlu1 %595  ;;  %v718_v6 = vpop.permute.xlu0 %717 }
 0x234   : > { %1932 = vmatpush3.bf16.msra.mxu1 %v596_v37 }
 0x235   : > { %1943 = vmatprep.subr.bf16.mxu1 %v2479_v0 }
 0x237   : > { %v2914_v10 = vpop.permute.xlu1 %838 }
 0x238   : > { %1976 = vmatmul.mubr.msk.bf16.vlgmr.msra.gmra.mrb[16].mxu0 %vm526_vm2, %v1011_v29 }
 0x239   : > { %1986 = vmatpush3.bf16.xpose.msra.mxu0 %v1139_v39  ;;  %1987 = vmatprep.mubr.msk.bf16.mxu0 %vm2480_vm0, %v2479_v0 }
 0x23a   : > { %1997 = vmatprep.subr.bf16.mxu0 %v2479_v0 }
 0x240   : > { %1988 = vmatmul.mubr.msk.bf16.vlgmr.msra.gmra.mrb[20].mxu0 %vm526_vm2, %v1132_v31 }
 0x241   : > { %1998 = vmatpush3.bf16.xpose.msra.mxu0 %v1260_v41  ;;  %1999 = vmatprep.mubr.msk.bf16.mxu0 %vm2480_vm0, %v2479_v0 }
 0x242   : > { %2009 = vmatprep.subr.bf16.mxu0 %v2479_v0 }
 0x248   : > { %2000 = vmatmul.mubr.msk.bf16.vlgmr.msra.gmra.mrb[24].mxu0 %vm526_vm2, %v1253_v33 }
 0x249   : > { %2010 = vmatpush3.bf16.xpose.msra.mxu0 %v1381_v43  ;;  %2011 = vmatprep.mubr.msk.bf16.mxu0 %vm2480_vm0, %v2479_v0 }
 0x24a   : > { %2021 = vmatprep.subr.bf16.mxu0 %v2479_v0 }
 0x250   : > { %2012 = vmatmul.mubr.msk.bf16.vlgmr.msra.gmra.mrb[28].mxu0 %vm526_vm2, %v1374_v35 }
 0x251   : > { %2029 = vmatprep.mubr.msk.bf16.mxu0 %vm2480_vm0, %v2479_v0 }
 0x281   : > { %v567_v44 = vpop.f32.mrb[4].mxu1 }
 0x282   : > { %v1929_v45 = vpop.f32.mrb[5].mxu1  ;;  %v575_v46 = vsel %vm574_vm3, %v567_v44, -inf }
 0x283   : > { %576 = vmax.xlane.f32.xlu0 %v575_v46  ;;  %v570_v47 = vpop.f32.mrb[6].mxu1 }
 0x284   : > { %v1930_v48 = vpop.f32.mrb[7].mxu1  ;;  %v578_v49 = vsel %vm574_vm3, %v570_v47, -inf }
 0x285   : > { %579 = vmax.xlane.f32.xlu1 %v578_v49 }
 0x2f3   : > { %v2884_v50 = vpop.f32.mrb[4].mxu0 }
 0x2f4   : > { %v1941_v51 = vpop.f32.mrb[5].mxu0  ;;  %v698_v52 = vsel %vm574_vm3, %v2884_v50, -inf }
 0x2f5   : > { %699 = vmax.xlane.f32.xlu0 %v698_v52  ;;  %v2888_v53 = vpop.f32.mrb[6].mxu0 }
 0x2f6   : > { %v1942_v54 = vpop.f32.mrb[7].mxu0  ;;  %v701_v55 = vsel %vm574_vm3, %v2888_v53, -inf }
 0x2f9   : > { %702 = vmax.xlane.f32.xlu0 %v701_v55 }
 0x2fb   : > { %v2892_v56 = vpop.f32.mrb[8].mxu0 }
 0x2fc   : > { %v1953_v57 = vpop.f32.mrb[9].mxu0  ;;  %v819_v58 = vsel %vm574_vm3, %v2892_v56, -inf }
 0x2fd   : > { %820 = vmax.xlane.f32.xlu1 %v819_v58  ;;  %v2896_v59 = vpop.f32.mrb[10].mxu0 }
 0x2fe   : > { %v1954_v60 = vpop.f32.mrb[11].mxu0  ;;  %v822_v61 = vsel %vm574_vm3, %v2896_v59, -inf }
 0x2ff   : > { %823 = vmax.xlane.f32.xlu0 %v822_v61 }
 0x303   : > { %v2900_v62 = vpop.f32.mrb[12].mxu0 }
 0x304   : > { %v1965_v63 = vpop.f32.mrb[13].mxu0  ;;  %v940_v1 = vsel %vm574_vm3, %v2900_v62, -inf }
 0x305   : > { %941 = vmax.xlane.f32.xlu1 %v940_v1  ;;  %v2904_v2 = vpop.f32.mrb[14].mxu0 }
 0x306   : > { %v1966_v3 = vpop.f32.mrb[15].mxu0  ;;  %v943_v4 = vsel %vm574_vm3, %v2904_v2, -inf }
 0x307   : > { %944 = vmax.xlane.f32.xlu0 %v943_v4 }
 0x30b   : > { %v2908_v5 = vpop.f32.mrb[16].mxu0 }
 0x30c   : > { %v1977_v7 = vpop.f32.mrb[17].mxu0  ;;  %v1061_v8 = vsel %vm574_vm3, %v2908_v5, -inf }
 0x30d   : > { %1062 = vmax.xlane.f32.xlu0 %v1061_v8  ;;  %v2912_v9 = vpop.f32.mrb[18].mxu0 }
 0x30e   : > { %v1978_v11 = vpop.f32.mrb[19].mxu0  ;;  %v1064_v13 = vsel %vm574_vm3, %v2912_v9, -inf }
 0x310   : > { %v577_v12 = vpop.xlane.xlu0 %576 }
 0x311   : > { %v581_v14 = vsub.f32 %v567_v44, %v577_v12  ;;  %1065 = vmax.xlane.f32.xlu0 %v1064_v13 }
 0x312   : > { %v580_v15 = vpop.xlane.xlu1 %579 }
 0x313   : > { %v583_v17 = vmul.f32 1.442695, %v581_v14  ;;  %v582_v18 = vsub.f32 %v570_v47, %v580_v15  ;;  %v2918_v19 = vpop.f32.mrb[20].mxu0 }
 0x314   : > { %v1989_v20 = vpop.f32.mrb[21].mxu0  ;;  %v1182_v21 = vsel %vm574_vm3, %v2918_v19, -inf }
 0x315   : > { %v585_v22 = vmul.f32 1.442695, %v582_v18  ;;  %1183 = vmax.xlane.f32.xlu1 %v1182_v21  ;;  %v2922_v23 = vpop.f32.mrb[22].mxu0  ;;  %2184 = vpow2.f32 %v583_v17 }
 0x316   : > { %v1990_v24 = vpop.f32.mrb[23].mxu0  ;;  %v1185_v25 = vsel %vm574_vm3, %v2922_v23, -inf }
 0x317   : > { %2186 = vpow2.f32 %v585_v22  ;;  %1186 = vmax.xlane.f32.xlu0 %v1185_v25 }
 0x31b   : > { %v2926_v26 = vpop.f32.mrb[24].mxu0 }
 0x31c   : > { %v2001_v27 = vpop.f32.mrb[25].mxu0  ;;  %v1303_v28 = vsel %vm574_vm3, %v2926_v26, -inf }
 0x31d   : > { %1304 = vmax.xlane.f32.xlu0 %v1303_v28  ;;  %v2930_v29 = vpop.f32.mrb[26].mxu0 }
 0x31e   : > { %v2002_v30 = vpop.f32.mrb[27].mxu0  ;;  %v1306_v32 = vsel %vm574_vm3, %v2930_v29, -inf }
 0x31f   : > { %v2932_v31 = vpop.eup %2184 }
 0x321   : > { %v2936_v33 = vpop.eup %2186  ;;  %1307 = vmax.xlane.f32.xlu0 %v1306_v32 }
 0x322   : > { %v593_v34 = vpack.c.bf16 %v2936_v33, %v2932_v31 }
 0x323   : > { %v2940_v35 = vpop.f32.mrb[28].mxu0 }
 0x324   : > { %1934 = vmatmul.mubr.msk.bf16.vlgmr.msra.gmra.mrb[8].mxu1 %vm574_vm3, %v593_v34  ;;  %v2013_v36 = vpop.f32.mrb[29].mxu0  ;;  %v1424_v37 = vsel %vm574_vm3, %v2940_v35, -inf }
 0x325   : > { %1944 = vmatpush3.bf16.msra.mxu1 %v718_v6  ;;  %1425 = vmax.xlane.f32.xlu0 %v1424_v37  ;;  %v2945_v38 = vpop.f32.mrb[30].mxu0 }
 0x326   : > { %959 = vrot.lane.b32.xlu1 %v2826_v16, %s2491_s26  ;;  %v2014_v39 = vpop.f32.mrb[31].mxu0  ;;  %1945 = vmatprep.mubr.msk.bf16.mxu1 %vm2480_vm0, %v2479_v0  ;;  %v1427_v40 = vsel %vm574_vm3, %v2945_v38, -inf }
 0x327   : > { %1955 = vmatprep.subr.bf16.mxu1 %v2479_v0 }
 0x33b   : > { %1080 = vrot.lane.b32.xlu0 %v2826_v16, %s2492_s10 }
 0x33f   : > { %1201 = vrot.lane.b32.xlu0 %v2826_v16, %s2493_s0 }
 0x343   : > { %1322 = vrot.lane.b32.xlu0 %v2826_v16, %s2494_s20 }
 0x347   : > { %1443 = vrot.lane.b32.xlu0 %v2826_v16, %s2495_s30 }
 0x34a   : > { %1428 = vmax.xlane.f32.xlu1 %v1427_v40 }
 0x382   : > { %v700_v41 = vpop.xlane.xlu0 %699 }
 0x383   : > { %v704_v42 = vsub.f32 %v2884_v50, %v700_v41 }
 0x385   : > { %v706_v43 = vmul.f32 1.442695, %v704_v42 }
 0x386   : > { %v703_v44 = vpop.xlane.xlu0 %702 }
 0x387   : > { %2188 = vpow2.f32 %v706_v43  ;;  %v705_v45 = vsub.f32 %v2888_v53, %v703_v44 }
 0x389   : > { %v708_v46 = vmul.f32 1.442695, %v705_v45 }
 0x38a   : > { %v821_v47 = vpop.xlane.xlu1 %820 }
 0x38b   : > { %2190 = vpow2.f32 %v708_v46  ;;  %v825_v48 = vsub.f32 %v2892_v56, %v821_v47 }
 0x38c   : > { %v824_v49 = vpop.xlane.xlu0 %823 }
 0x38d   : > { %v827_v51 = vmul.f32 1.442695, %v825_v48  ;;  %v826_v16 = vsub.f32 %v2896_v59, %v824_v49 }
 0x38f   : > { %2192 = vpow2.f32 %v827_v51  ;;  %v829_v52 = vmul.f32 1.442695, %v826_v16 }
 0x391   : > { %v2189_v54 = vpop.eup %2188  ;;  %2194 = vpow2.f32 %v829_v52 }
 0x392   : > { %v942_v55 = vpop.xlane.xlu1 %941  ;;  %v710_v50 = vsel %vm574_vm3, %v2189_v54, 0.0 }
 0x393   : > { %v946_v57 = vsub.f32 %v2900_v62, %v942_v55  ;;  %711 = vadd.xlane.f32.xlu0 %v710_v50 }
 0x394   : > { %v945_v53 = vpop.xlane.xlu0 %944 }
 0x395   : > { %v2191_v58 = vpop.eup %2190  ;;  %v948_v60 = vmul.f32 1.442695, %v946_v57  ;;  %v947_v61 = vsub.f32 %v2904_v2, %v945_v53  ;;  %v587_v57 = vsel %vm574_vm3, %v2932_v31, 0.0  ;;  %v590_v31 = vsel %vm574_vm3, %v2936_v33, 0.0 }
 0x396   : > { %v713_v56 = vsel %vm574_vm3, %v2191_v58, 0.0  ;;  %v716_v63 = vpack.c.bf16 %v2191_v58, %v2189_v54 }
 0x397   : > { %2196 = vpow2.f32 %v948_v60  ;;  %v950_v59 = vmul.f32 1.442695, %v947_v61  ;;  %714 = vadd.xlane.f32.xlu1 %v713_v56 }
 0x398   : > { %1946 = vmatmul.mubr.msk.bf16.vlgmr.msra.gmra.mrb[12].mxu1 %vm574_vm3, %v716_v63 }
 0x399   : > { %v2193_v1 = vpop.eup %2192  ;;  %2198 = vpow2.f32 %v950_v59  ;;  %1956 = vmatpush3.bf16.msra.mxu1 %v2914_v10  ;;  %1957 = vmatprep.mubr.msk.bf16.mxu1 %vm2480_vm0, %v2479_v0 }
 0x39a   : > { %v1063_v62 = vpop.xlane.xlu0 %1062  ;;  %v831_v3 = vsel %vm574_vm3, %v2193_v1, 0.0  ;;  %1967 = vmatprep.subr.bf16.mxu1 %v2479_v0 }
 0x39b   : > { %v2195_v2 = vpop.eup %2194  ;;  %v1067_v4 = vsub.f32 %v2908_v5, %v1063_v62  ;;  %832 = vadd.xlane.f32.xlu1 %v831_v3 }
 0x39c   : > { %v837_v6 = vpack.c.bf16 %v2195_v2, %v2193_v1  ;;  %v834_v11 = vsel %vm574_vm3, %v2195_v2, 0.0 }
 0x39d   : > { %v1069_v7 = vmul.f32 1.442695, %v1067_v4 }
 0x39e   : > { %v1066_v8 = vpop.xlane.xlu0 %1065 }
 0x39f   : > { %2200 = vpow2.f32 %v1069_v7  ;;  %v1068_v10 = vsub.f32 %v2912_v9, %v1066_v8  ;;  %835 = vadd.xlane.f32.xlu1 %v834_v11 }
 0x3a0   : > { %1958 = vmatmul.mubr.msk.bf16.vlgmr.msra.gmra.mrb[16].mxu1 %vm574_vm3, %v837_v6 }
 0x3a1   : > { %v2197_v12 = vpop.eup %2196  ;;  %v1071_v13 = vmul.f32 1.442695, %v1068_v10  ;;  %1969 = vmatprep.mubr.msk.bf16.mxu1 %vm2480_vm0, %v2479_v0 }
 0x3a2   : > { %v1184_v14 = vpop.xlane.xlu1 %1183  ;;  %v952_v5 = vsel %vm574_vm3, %v2197_v12, 0.0 }
 0x3a3   : > { %v2199_v15 = vpop.eup %2198  ;;  %2202 = vpow2.f32 %v1071_v13  ;;  %v1188_v17 = vsub.f32 %v2918_v19, %v1184_v14  ;;  %953 = vadd.xlane.f32.xlu1 %v952_v5 }
 0x3a4   : > { %v1187_v18 = vpop.xlane.xlu0 %1186  ;;  %v958_v20 = vpack.c.bf16 %v2199_v15, %v2197_v12  ;;  %v955_v24 = vsel %vm574_vm3, %v2199_v15, 0.0 }
 0x3a5   : > { %v1190_v21 = vmul.f32 1.442695, %v1188_v17  ;;  %v1189_v9 = vsub.f32 %v2922_v23, %v1187_v18 }
 0x3a6   : > { %v960_v22 = vpop.permute.xlu1 %959 }
 0x3a7   : > { %2204 = vpow2.f32 %v1190_v21  ;;  %v1192_v25 = vmul.f32 1.442695, %v1189_v9  ;;  %1968 = vmatpush3.bf16.msra.mxu1 %v960_v22  ;;  %956 = vadd.xlane.f32.xlu1 %v955_v24 }
 0x3a8   : > { %1979 = vmatprep.subr.bf16.mxu1 %v2479_v0 }
 0x3a9   : > { %v2201_v27 = vpop.eup %2200  ;;  %2206 = vpow2.f32 %v1192_v25 }
 0x3aa   : > { %1970 = vmatmul.mubr.msk.bf16.vlgmr.msra.gmra.mrb[20].mxu1 %vm574_vm3, %v958_v20  ;;  %v1305_v19 = vpop.xlane.xlu0 %1304  ;;  %v1073_v28 = vsel %vm574_vm3, %v2201_v27, 0.0 }
 0x3ab   : > { %v1309_v30 = vsub.f32 %v2926_v26, %v1305_v19  ;;  %1074 = vadd.xlane.f32.xlu1 %v1073_v28  ;;  %1981 = vmatprep.mubr.msk.bf16.mxu1 %vm2480_vm0, %v2479_v0 }
 0x3ad   : > { %v2203_v23 = vpop.eup %2202  ;;  %v1311_v32 = vmul.f32 1.442695, %v1309_v30 }
 0x3ae   : > { %v1308_v34 = vpop.xlane.xlu0 %1307  ;;  %v1076_v36 = vsel %vm574_vm3, %v2203_v23, 0.0  ;;  %v1079_v37 = vpack.c.bf16 %v2203_v23, %v2201_v27 }
 0x3af   : > { %2208 = vpow2.f32 %v1311_v32  ;;  %v1310_v39 = vsub.f32 %v2930_v29, %v1308_v34  ;;  %1077 = vadd.xlane.f32.xlu1 %v1076_v36 }
 0x3b1   : > { %v2205_v40 = vpop.eup %2204  ;;  %v1313_v41 = vmul.f32 1.442695, %v1310_v39 }
 0x3b2   : > { %v1426_v42 = vpop.xlane.xlu0 %1425  ;;  %v1194_v43 = vsel %vm574_vm3, %v2205_v40, 0.0 }
 0x3b3   : > { %v2207_v26 = vpop.eup %2206  ;;  %2210 = vpow2.f32 %v1313_v41  ;;  %v1430_v44 = vsub.f32 %v2940_v35, %v1426_v42  ;;  %1195 = vadd.xlane.f32.xlu1 %v1194_v43 }
 0x3b4   : > { %v1197_v45 = vsel %vm574_vm3, %v2207_v26, 0.0  ;;  %v1200_v46 = vpack.c.bf16 %v2207_v26, %v2205_v40 }
 0x3b5   : > { %v1432_v47 = vmul.f32 1.442695, %v1430_v44  ;;  %1198 = vadd.xlane.f32.xlu0 %v1197_v45 }
 0x3b6   : > { %v1081_v48 = vpop.permute.xlu0 %1080 }
 0x3b7   : > { %2212 = vpow2.f32 %v1432_v47  ;;  %1980 = vmatpush3.bf16.msra.mxu1 %v1081_v48 }
 0x3b8   : > { %1991 = vmatprep.subr.bf16.mxu1 %v2479_v0 }
 0x3b9   : > { %v2209_v29 = vpop.eup %2208 }
 0x3ba   : > { %1982 = vmatmul.mubr.msk.bf16.vlgmr.msra.gmra.mrb[24].mxu1 %vm574_vm3, %v1079_v37  ;;  %v1202_v49 = vpop.permute.xlu0 %1201  ;;  %v1315_v51 = vsel %vm574_vm3, %v2209_v29, 0.0 }
 0x3bb   : > { %1992 = vmatpush3.bf16.msra.mxu1 %v1202_v49  ;;  %1316 = vadd.xlane.f32.xlu1 %v1315_v51 }
 0x3bc   : > { %1993 = vmatprep.mubr.msk.bf16.mxu1 %vm2480_vm0, %v2479_v0  ;;  %2003 = vmatprep.subr.bf16.mxu1 %v2479_v0 }
 0x3bd   : > { %v2211_v35 = vpop.eup %2210 }
 0x3be   : > { %v1318_v16 = vsel %vm574_vm3, %v2211_v35, 0.0  ;;  %v1321_v52 = vpack.c.bf16 %v2211_v35, %v2209_v29  ;;  %v1323_v55 = vpop.permute.xlu0 %1322 }
 0x3bf   : > { %1319 = vadd.xlane.f32.xlu0 %v1318_v16 }
 0x3c1   : > { %v2213_v54 = vpop.eup %2212 }
 0x3c2   : > { %1994 = vmatmul.mubr.msk.bf16.vlgmr.msra.gmra.mrb[28].mxu1 %vm574_vm3, %v1200_v46  ;;  %v1436_v50 = vsel %vm574_vm3, %v2213_v54, 0.0  ;;  %v1444_v53 = vpop.permute.xlu0 %1443 }
 0x3c3   : > { %2004 = vmatpush3.bf16.msra.mxu1 %v1323_v55  ;;  %1437 = vadd.xlane.f32.xlu1 %v1436_v50 }
 0x3c4   : > { %2005 = vmatprep.mubr.msk.bf16.mxu1 %vm2480_vm0, %v2479_v0  ;;  %2015 = vmatprep.subr.bf16.mxu1 %v2479_v0 }
 0x3c7   : > { %588 = vadd.xlane.f32.xlu1 %v587_v57 }
 0x3ca   : > { %2006 = vmatmul.mubr.msk.bf16.vlgmr.msra.gmra.mrb[32].mxu1 %vm574_vm3, %v1321_v52 }
 0x3cb   : > { %2016 = vmatpush3.bf16.msra.mxu1 %v1444_v53  ;;  %2017 = vmatprep.mubr.msk.bf16.mxu1 %vm2480_vm0, %v2479_v0 }
 0x3d7   : > { %v1429_v58 = vpop.xlane.xlu1 %1428 }
 0x3d8   : > { %v1431_v60 = vsub.f32 %v2945_v38, %v1429_v58 }
 0x3da   : > { %v1434_v61 = vmul.f32 1.442695, %v1431_v60 }
 0x3dc   : > { %2214 = vpow2.f32 %v1434_v61 }
 0x3e6   : > { %v2215_v56 = vpop.eup %2214 }
 0x3e7   : > { %v1439_v63 = vsel %vm574_vm3, %v2215_v56, 0.0  ;;  %v1442_v59 = vpack.c.bf16 %v2215_v56, %v2213_v54 }
 0x3e8   : > { %1440 = vadd.xlane.f32.xlu0 %v1439_v63  ;;  %v2180_v63 = vld [vmem:[#allocation10] sm:$0xff]  }
 0x3e9   : > { %2018 = vmatmul.mubr.msk.bf16.vlgmr.msra.gmra.mrb[36].mxu1 %vm574_vm3, %v1442_v59  ;;  %2022 = vmatpush3.bf16.msra.mxu0 %v2180_v63 }
 0x3ea   : > { %2023 = vmatprep.subr.bf16.mxu0 %v2479_v0 }
 0x3ec   : > { %591 = vadd.xlane.f32.xlu0 %v590_v31  ;;  %v2181_v31 = vld [vmem:[#allocation10 + $0x8] sm:$0xff]  }
 0x3ed   : > { %2024 = vmatpush3.bf16.msra.mxu0 %v2181_v31 }
 0x3ee   : > { %2025 = vmatprep.subr.bf16.mxu0 %v2479_v0 }
 0x3f7   : > { %v3019_v1 = vpop.f32.mrb[8].mxu1 }
 0x3f8   : > { %v1935_v62 = vpop.f32.mrb[9].mxu1 }
 0x3f9   : > { %v3021_v3 = vpop.f32.mrb[10].mxu1 }
 0x3fa   : > { %v1936_v2 = vpop.f32.mrb[11].mxu1 }
 0x420   : > { %v712_v4 = vpop.xlane.xlu0 %711 }
 0x421   : > { %2216 = vrcp.f32 %v712_v4 }
 0x424   : > { %v715_v38 = vpop.xlane.xlu1 %714 }
 0x425   : > { %2218 = vrcp.f32 %v715_v38 }
 0x428   : > { %v833_v6 = vpop.xlane.xlu1 %832 }
 0x429   : > { %2220 = vrcp.f32 %v833_v6 }
 0x42b   : > { %v2217_v11 = vpop.eup %2216 }
 0x42c   : > { %v836_v7 = vpop.xlane.xlu1 %835 }
 0x42d   : > { %2222 = vrcp.f32 %v836_v7  ;;  %v2182_v7 = vld [vmem:[#allocation10 + $0x10] sm:$0xff]  }
 0x42e   : > { %2026 = vmatpush3.bf16.msra.mxu0 %v2182_v7 }
 0x42f   : > { %v2219_v33 = vpop.eup %2218  ;;  %2027 = vmatprep.subr.bf16.mxu0 %v2479_v0 }
 0x430   : > { %v954_v10 = vpop.xlane.xlu1 %953 }
 0x431   : > { %2224 = vrcp.f32 %v954_v10 }
 0x433   : > { %v2221_v21 = vpop.eup %2220 }
 0x434   : > { %v957_v18 = vpop.xlane.xlu1 %956 }
 0x435   : > { %2226 = vrcp.f32 %v957_v18 }
 0x437   : > { %v2223_v22 = vpop.eup %2222 }
 0x438   : > { %v1075_v30 = vpop.xlane.xlu1 %1074 }
 0x439   : > { %2228 = vrcp.f32 %v1075_v30 }
 0x43b   : > { %v2225_v32 = vpop.eup %2224 }
 0x43c   : > { %v1078_v42 = vpop.xlane.xlu1 %1077 }
 0x43d   : > { %2230 = vrcp.f32 %v1078_v42 }
 0x43f   : > { %v2227_v36 = vpop.eup %2226 }
 0x440   : > { %v1196_v26 = vpop.xlane.xlu1 %1195 }
 0x441   : > { %2232 = vrcp.f32 %v1196_v26 }
 0x442   : > { %v1199_v44 = vpop.xlane.xlu0 %1198 }
 0x443   : > { %2234 = vrcp.f32 %v1199_v44  ;;  %v2229_v46 = vpop.eup %2228 }
 0x447   : > { %v2231_v48 = vpop.eup %2230 }
 0x448   : > { %v1317_v16 = vpop.xlane.xlu1 %1316 }
 0x449   : > { %2236 = vrcp.f32 %v1317_v16 }
 0x44b   : > { %v2233_v50 = vpop.eup %2232 }
 0x44c   : > { %v1320_v52 = vpop.xlane.xlu0 %1319 }
 0x44d   : > { %2238 = vrcp.f32 %v1320_v52  ;;  %v2235_v53 = vpop.eup %2234 }
 0x453   : > { %v2237_v2 = vpop.eup %2236 }
 0x457   : > { %v2239_v4 = vpop.eup %2238 }
 0x46b   : > { %v757_v8 = vpop.f32.mrb[12].mxu1 }
 0x46c   : > { %v1947_v12 = vpop.f32.mrb[13].mxu1  ;;  %v766_v14 = vmul.f32 %v2217_v11, %v757_v8 }
 0x46d   : > { %v760_v13 = vpop.f32.mrb[14].mxu1 }
 0x46e   : > { %v767_v5 = vmul.f32 %v2219_v33, %v760_v13  ;;  %v1948_v15 = vpop.f32.mrb[15].mxu1  ;;  %v1438_v33 = vpop.xlane.xlu1 %1437 }
 0x46f   : > { %2240 = vrcp.f32 %v1438_v33 }
 0x470   : > { %v2135_v17 = vpack.i.bf16 %v767_v5, %v766_v14  ;;  %v2183_v14 = vld [vmem:[#allocation10 + $0x18] sm:$0xff]  }
 0x471   : > { %2028 = vmatpush3.bf16.msra.mxu0 %v2183_v14 }
 0x472   : > { %2136 = vrot.lane.b32.xlu1 %v2135_v17, %s2495_s30 }
 0x473   : > { %v878_v20 = vpop.f32.mrb[16].mxu1 }
 0x474   : > { %v1959_v9 = vpop.f32.mrb[17].mxu1  ;;  %v887_v25 = vmul.f32 %v2221_v21, %v878_v20 }
 0x475   : > { %v881_v24 = vpop.f32.mrb[18].mxu1  ;;  %v1441_v13 = vpop.xlane.xlu0 %1440 }
 0x476   : > { %v888_v27 = vmul.f32 %v2223_v22, %v881_v24  ;;  %v1960_v19 = vpop.f32.mrb[19].mxu1  ;;  %2242 = vrcp.f32 %v1441_v13 }
 0x478   : > { %v2140_v28 = vpack.i.bf16 %v888_v27, %v887_v25  ;;  %v589_v25 = vpop.xlane.xlu1 %588 }
 0x479   : > { %v2241_v15 = vpop.eup %2240  ;;  %v592_v27 = vpop.xlane.xlu0 %591  ;;  %2244 = vrcp.f32 %v589_v25 }
 0x47a   : > { %2141 = vrot.lane.b32.xlu0 %v2140_v28, %s2494_s20  ;;  %2246 = vrcp.f32 %v592_v27 }
 0x47d   : > { %v999_v23 = vpop.f32.mrb[20].mxu1 }
 0x47e   : > { %v1971_v34 = vpop.f32.mrb[21].mxu1  ;;  %v1008_v39 = vmul.f32 %v2225_v32, %v999_v23 }
 0x47f   : > { %v1002_v37 = vpop.f32.mrb[22].mxu1 }
 0x480   : > { %v1009_v40 = vmul.f32 %v2227_v36, %v1002_v37  ;;  %v1972_v41 = vpop.f32.mrb[23].mxu1  ;;  %v2243_v18 = vpop.eup %2242 }
 0x482   : > { %v2145_v43 = vpack.i.bf16 %v1009_v40, %v1008_v39 }
 0x483   : > { %v2245_v30 = vpop.eup %2244 }
 0x484   : > { %2146 = vrot.lane.b32.xlu1 %v2145_v43, %s2493_s0  ;;  %v2247_v32 = vpop.eup %2246  ;;  %v644_v37 = vmul.f32 %v2245_v30, %v3019_v1 }
 0x485   : > { %v645_v42 = vmul.f32 %v2247_v32, %v3021_v3 }
 0x48d   : > { %v1120_v45 = vpop.f32.mrb[24].mxu1 }
 0x48e   : > { %v1983_v47 = vpop.f32.mrb[25].mxu1  ;;  %v1129_v49 = vmul.f32 %v2229_v46, %v1120_v45 }
 0x48f   : > { %v1123_v29 = vpop.f32.mrb[26].mxu1 }
 0x490   : > { %v1130_v51 = vmul.f32 %v2231_v48, %v1123_v29  ;;  %v1984_v35 = vpop.f32.mrb[27].mxu1 }
 0x492   : > { %v2150_v54 = vpack.i.bf16 %v1130_v51, %v1129_v49 }
 0x494   : > { %2151 = vrot.lane.b32.xlu1 %v2150_v54, %s2492_s10 }
 0x495   : > { %v1241_v55 = vpop.f32.mrb[28].mxu1 }
 0x496   : > { %v1995_v57 = vpop.f32.mrb[29].mxu1  ;;  %v1250_v60 = vmul.f32 %v2233_v50, %v1241_v55 }
 0x497   : > { %v1244_v58 = vpop.f32.mrb[30].mxu1 }
 0x498   : > { %v1251_v61 = vmul.f32 %v2235_v53, %v1244_v58  ;;  %v1996_v56 = vpop.f32.mrb[31].mxu1 }
 0x49a   : > { %v2155_v59 = vpack.i.bf16 %v1251_v61, %v1250_v60 }
 0x49c   : > { %2156 = vrot.lane.b32.xlu0 %v2155_v59, %s2491_s26 }
 0x49d   : > { %v1362_v62 = vpop.f32.mrb[32].mxu1 }
 0x49e   : > { %v2007_v38 = vpop.f32.mrb[33].mxu1  ;;  %v1371_v8 = vmul.f32 %v2237_v2, %v1362_v62  ;;  %v1840_v62 = vld [vmem:[%s3108_s5] ss:$0 sm:$0xff] }
 0x49f   : > { %v1365_v6 = vpop.f32.mrb[34].mxu1 }
 0x4a0   : > { %v1372_v11 = vmul.f32 %v2239_v4, %v1365_v6  ;;  %v2008_v10 = vpop.f32.mrb[35].mxu1 }
 0x4a2   : > { %v2160_v12 = vpack.i.bf16 %v1372_v11, %v1371_v8 }
 0x4a4   : > { %2161 = vrot.lane.b32.xlu1 %v2160_v12, %s2490_s12 }
 0x4bc   : > { %v1483_v5 = vpop.f32.mrb[36].mxu1 }
 0x4bd   : > { %v2019_v17 = vpop.f32.mrb[37].mxu1  ;;  %v1492_v21 = vmul.f32 %v2241_v15, %v1483_v5 }
 0x4be   : > { %v1486_v20 = vpop.f32.mrb[38].mxu1 }
 0x4bf   : > { %v1493_v9 = vmul.f32 %v2243_v18, %v1486_v20  ;;  %v2020_v22 = vpop.f32.mrb[39].mxu1 }
 0x4c1   : > { %v2165_v24 = vpack.i.bf16 %v1493_v9, %v1492_v21 }
 0x4c3   : > { %2166 = vrot.lane.b32.xlu0 %v2165_v24, %s2489_s3  ;;  %s2398_s3 = scalar_lea.vmem %s2397_s17, 512 }
 0x4c4   : > { %p2400_p6 = scmp.lt.s32.totalorder %s2398_s3, %s2392_s16 }
 0x4c6   : > { %p2401_p10 = por %p2400_p6, %p2399_p8 }
 0x4c8   : > { %p2402_p3 = pnand %p2401_p10, %p2395_p0 }
 0x4e4   : > { %v2137_v0 = vpop.permute.xlu1 %2136 }
 0x4e5   : > { %v2139_v34 = vunpack.i.h.bf16 %v2137_v0  ;;  %v2138_v36 = vunpack.i.l.bf16 %v2137_v0 }
 0x4e7   : > { %v1551_v47 = vsel %vm526_vm2, %v645_v42, %v2139_v34  ;;  %v1550_v48 = vsel %vm526_vm2, %v644_v37, %v2138_v36 }
 0x4ec   : > { %v2142_v28 = vpop.permute.xlu0 %2141 }
 0x4ed   : > { %v2144_v39 = vunpack.i.h.bf16 %v2142_v28  ;;  %v2143_v40 = vunpack.i.l.bf16 %v2142_v28 }
 0x4ef   : > { %v1552_v1 = vsel %vm574_vm3, %v1550_v48, %v2143_v40  ;;  %v1553_v51 = vsel %vm574_vm3, %v1551_v47, %v2144_v39 }
 0x4f6   : > { %v2147_v19 = vpop.permute.xlu1 %2146 }
 0x4f7   : > { %v2149_v43 = vunpack.i.h.bf16 %v2147_v19  ;;  %v2148_v26 = vunpack.i.l.bf16 %v2147_v19 }
 0x4f9   : > { %v1555_v16 = vsel %vm1554_vm4, %v1552_v1, %v2148_v26  ;;  %v1556_v52 = vsel %vm1554_vm4, %v1553_v51, %v2149_v43 }
 0x506   : > { %v2152_v23 = vpop.permute.xlu1 %2151 }
 0x507   : > { %v2154_v45 = vunpack.i.h.bf16 %v2152_v23  ;;  %v2153_v46 = vunpack.i.l.bf16 %v2152_v23 }
 0x509   : > { %v1558_v54 = vsel %vm1557_vm5, %v1555_v16, %v2153_v46  ;;  %v1559_v55 = vsel %vm1557_vm5, %v1556_v52, %v2154_v45 }
 0x50e   : > { %v2157_v41 = vpop.permute.xlu0 %2156 }
 0x50f   : > { %v2159_v29 = vunpack.i.h.bf16 %v2157_v41  ;;  %v2158_v49 = vunpack.i.l.bf16 %v2157_v41 }
 0x511   : > { %v1561_v57 = vsel %vm1560_vm6, %v1558_v54, %v2158_v49  ;;  %v1562_v53 = vsel %vm1560_vm6, %v1559_v55, %v2159_v29 }
 0x516   : > { %v2162_v44 = vpop.permute.xlu1 %2161 }
 0x517   : > { %v2164_v35 = vunpack.i.h.bf16 %v2162_v44  ;;  %v2163_v3 = vunpack.i.l.bf16 %v2162_v44 }
 0x519   : > { %v1564_v61 = vsel %vm1563_vm7, %v1561_v57, %v2163_v3  ;;  %v1565_v56 = vsel %vm1563_vm7, %v1562_v53, %v2164_v35 }
 0x535   : > { %v2167_v50 = vpop.permute.xlu0 %2166 }
 0x536   : > { %v2169_v58 = vunpack.i.h.bf16 %v2167_v50  ;;  %v2168_v60 = vunpack.i.l.bf16 %v2167_v50 }
 0x538   : > { %v1567_v63 = vsel %vm1566_vm8, %v1564_v61, %v2168_v60  ;;  %v1568_v59 = vsel %vm1566_vm8, %v1565_v56, %v2169_v58 }
 0x539   : > { %v1569_v31 = vpack.c.bf16 %v1568_v59, %v1567_v63 }
 0x53b   : > { %2030 = vmatmul.mubr.msk.bf16.vlgmr.msra.gmra.mrb[32].mxu0 %vm398_vm1, %v1569_v31 }
 0x60e   : > { %v1646_v2 = vpop.f32.mrb[32].mxu0 }
 0x60f   : > { %v1647_v38 = vadd.f32 %v1840_v62, %v1646_v2  ;;  %v2031_v4 = vpop.f32.mrb[33].mxu0 }
 0x610   : > { %v1649_v6 = vpop.f32.mrb[34].mxu0 }
 0x611   : > { %1653 = vst.msk [vmem:[%s352_s19] sm:$0xff] %vm398_vm1, %v1647_v38  ;;  %v1650_v7 = vadd.f32 %v1840_v62, %v1649_v6  ;;  %v2032_v8 = vpop.f32.mrb[35].mxu0 }
 0x613   : > { %1654 = vst.msk [vmem:[%s352_s19 + $0x8] sm:$0xff] %vm398_vm1, %v1650_v7 }
 0x614   : > { %2405 = shalt.err (!%p2402_p3)
}
 0x615   : > { %s2406_s12 = scalar_lea.hbm %s3057_s7, 256  ;;  %s2410_s0 = scalar_lea.hbm %s3109_s6, 512 }
 0x616   : > { %p2407_p9 = scmp.ne.s32.totalorder %s3057_s7, %s2406_s12  ;;  %p2411_p7 = scmp.lt.u32.totalorder %s3057_s7, %s3109_s6 }
 0x617   : > { %p2412_p12 = scmp.lt.u32.totalorder %s2410_s0, %s2406_s12  ;;  %p2414_p2 = scmp.lt.u32.totalorder %s2406_s12, %s3057_s7 }
 0x618   : > { %p2408_p13 = pnand %p2407_p9, %p2687_p5 }
 0x619   : > { %p2413_p1 = por %p2412_p12, %p2411_p7 }
 0x61a   : > { %p2409_p11 = pneg %p2408_p13 }
 0x61b   : > { %p2415_p4 = por %p2414_p2, %p2413_p1 }
 0x61d   : > { %p2416_p0 = pnand %p2415_p4, %p2409_p11 }
 0x61f   : > { %2419 = shalt.err (!%p2416_p0)
}
 0x620   : > { %s2497_s11 = smov 128  }
 0x621   : > { %2049 = dma.vmem_to_hbm [thread:$0]  (%p2687_p5), %s3051_s27, 256, %s3057_s7, %s1656_s25, %s2497_s11, %s2497_s11, %s2495_s30  }
 0x622 PF: > { %s1684_s29 = sand.u32 1, %s2458_s21   ;;  %p3142_p8 = scmp.ne.s32.totalorder %s3122_s28, 0 }
 0x623   : > { %p3143_p6 = scmp.ge.s32.totalorder %s2470_s24, 2  ;;  %s1685_s19 = scalar_lea.sflag [#allocation4], %s1684_s29 }
 0x625   : > { %p2069_p10 = pnand %p3143_p6, %p3142_p8 }
 0x627   : > { %2453 = dma.done.wait (!%p2069_p10), %s1685_s19, 256  }
 0x628   : > { %2455 = vsyncadd (!%p2069_p10), %s1685_s19, 4294967040  ;;  %s3144_s15 = sld [smem:[#allocation17_spill]]  ;;  %p23_p3 = scmp.ge.s32.totalorder %s2673_s18, 4  }
 0x629   : > { %s3145_s21 = smov %s2462_s22  ;;  %s3146_s22 = smov %s2466_s23 }
 0x62a   : > { %s3148_s24 = smov %s2673_s18  ;;  %25 = sbr.rel (!%p23_p3) target bundleno = 13 (0xd), region = 114 }
 0x62e   : > { %s3147_s23 = smov %s3144_s15 }
 0x631   :  { %1690 = vsyncpa [#allocation3], 1 }
 0x632   :  { %1692 = vsyncpa [#allocation3 + $0x1], 1 }
 0x633   :  { %1693 = vsyncpa [#allocation6], 1 }
 0x634   :  { %1695 = vsyncpa [#allocation6 + $0x1], 1 }
 0x635   :  { %1696 = vsyncpa [#allocation9], 1 }
 0x636   :  { %1697 = vsyncpa [#allocation4], 1 }
 0x637   :  { %1699 = vsyncpa [#allocation4 + $0x1], 1 }

</bundles_post_ra>
